<compile_context>
chip_gen: v5e
topology: v5e:2x2
jax: 0.10.0
libtpu: 0.0.40
codegen_flags: <defaults>
</compile_context>

<pallas_src>
import functools
import math

import jax
import jax.numpy as jnp
import numpy as np
from jax.experimental import pallas as pl
from jax.experimental.pallas import tpu as pltpu


# ----------------------------------------------------------------------------
# Fused kernel: Q/KV projections + key-tiled heads-softmax attention +
# quirky reshape + output projection.  Grid = (batch, key-chunk).
# ----------------------------------------------------------------------------
def _mhca_kernel(x_ref, y_ref, wkv_ref, bkv_ref, wq_ref, bq_ref, wl_ref, bl_ref,
                 out_ref, q_scr, scores_scr, acc_scr, vals_scr,
                 *, num_heads, head_dim, num_k_chunks):
    H, hd = num_heads, head_dim
    D = H * hd
    c = pl.program_id(1)

    # ---- once per batch element: scaled Q projection + zero the attn@V acc ----
    @pl.when(c == 0)
    def _():
        # 1/sqrt(hd) is folded into wq/bq wrapper-side.
        q_scr[...] = (jnp.dot(y_ref[0], wq_ref[...],
                              preferred_element_type=jnp.float32) + bq_ref[...])
        acc_scr[...] = jnp.zeros_like(acc_scr)

    # ---- fused K|V projection for this key chunk: (Tk, 2D) ----
    kv = (jnp.dot(x_ref[0], wkv_ref[...],
                  preferred_element_type=jnp.float32) + bkv_ref[...])

    # ---- per-head QK^T into the (H, S, Tk) scratch; running max over heads ----
    m = None
    for h in range(H):
        q_h = q_scr[:, h * hd:(h + 1) * hd]                 # (S, hd), pre-scaled
        k_h = kv[:, h * hd:(h + 1) * hd]                    # (Tk, hd)
        s_h = jax.lax.dot_general(                          # (S, Tk), no explicit .T
            q_h, k_h, dimension_numbers=(((1,), (1,)), ((), ())),
            preferred_element_type=jnp.float32)
        scores_scr[h] = s_h
        m = s_h if m is None else jnp.maximum(m, s_h)

    # ---- softmax over the HEADS axis (PyTorch legacy implicit dim=1) ----
    # Normalization is over heads, not keys, so each key chunk is independent.
    denom = None
    for h in range(H):
        e_h = jnp.exp(scores_scr[h] - m)
        scores_scr[h] = e_h                                 # in place: scores -> exp
        denom = e_h if denom is None else denom + e_h
    inv = pl.reciprocal(denom)                              # exact (1e-5 tolerance)

    # ---- attn @ V, accumulated per head at static lane offsets ----
    for h in range(H):
        v_h = kv[:, D + h * hd:D + (h + 1) * hd]            # (Tk, hd)
        attn_h = scores_scr[h] * inv                        # (S, Tk)
        acc_scr[:, h * hd:(h + 1) * hd] += jnp.dot(
            attn_h, v_h, preferred_element_type=jnp.float32)

    # ---- last chunk: quirky reshape + fused output projection ----
    @pl.when(c == num_k_chunks - 1)
    def _():
        S = acc_scr.shape[0]
        sH = S // H
        # acc is in natural "heads on lanes" layout: acc[s, h*hd+d] = vals[h, s, d].
        # PyTorch quirk #2 wants vals2d[h*sH + a, jj*hd + d] = vals[h, a*H+jj, d].
        acc3 = acc_scr[...].reshape(sH, H, D)               # acc3[a, jj, col]
        for h in range(H):
            for jj in range(H):
                vals_scr[h * sH:(h + 1) * sH, jj * hd:(jj + 1) * hd] = (
                    acc3[:, jj, h * hd:(h + 1) * hd])
        out = (jnp.dot(vals_scr[...], wl_ref[...],
                       preferred_element_type=jnp.float32) + bl_ref[...])
        out_ref[0] = out.astype(out_ref.dtype)


def _pick_key_tile(S):
    for tk in (512, 256, 128):
        if S % tk == 0:
            return tk
    return S


def fused_mhca(x, y, wkv_t, bkv, wq_t, bq, wl_t, bl, num_heads):
    B, S, D = x.shape
    hd = D // num_heads
    tk = _pick_key_tile(S)
    nck = S // tk
    kernel = functools.partial(_mhca_kernel, num_heads=num_heads,
                               head_dim=hd, num_k_chunks=nck)

    def call(single_buffer_weights):
        if single_buffer_weights:
            def const(shape):  # constant blocks: fetched once, single-buffered
                return pl.BlockSpec(shape, lambda b, c: (0, 0),
                                    pipeline_mode=pl.Buffered(1))
        else:
            def const(shape):
                return pl.BlockSpec(shape, lambda b, c: (0, 0))

        return pl.pallas_call(
            kernel,
            out_shape=jax.ShapeDtypeStruct((B, S, D), jnp.float32),
            grid=(B, nck),
            in_specs=[
                pl.BlockSpec((1, tk, D), lambda b, c: (b, c, 0)),   # x (key chunk)
                pl.BlockSpec((1, S, D), lambda b, c: (b, 0, 0)),    # y (full)
                const((D, 2 * D)), const((1, 2 * D)),               # wkv | bkv (de-interleaved)
                const((D, D)), const((1, D)),                       # wq  | bq  (pre-scaled)
                const((D, D)), const((1, D)),                       # wl  | bl
            ],
            out_specs=pl.BlockSpec((1, S, D), lambda b, c: (b, 0, 0)),
            scratch_shapes=[
                pltpu.VMEM((S, D), jnp.float32),                # q (scaled)
                pltpu.VMEM((num_heads, S, tk), jnp.float32),    # scores / exp, in place
                pltpu.VMEM((S, D), jnp.float32),                # attn@V accumulator
                pltpu.VMEM((S, D), jnp.float32),                # quirky-reshaped values
            ],
            compiler_params=pltpu.CompilerParams(
                dimension_semantics=("parallel", "arbitrary"),
                # Key tiling caps the attention working set; 48 MiB fits v7x's
                # 64 MiB physical VMEM and is well under 128 MiB on v5e/v6e.
                vmem_limit_bytes=48 * 1024 * 1024),
        )(x, y, wkv_t, bkv, wq_t, bq, wl_t, bl)

    try:
        return call(True)
    except Exception:
        # pipeline_mode=pl.Buffered(1) not accepted by this JAX build; the
        # default double-buffered weight blocks are still correct.
        return call(False)


# ----------------------------------------------------------------------------
# Module wrapper (parameter plumbing / one-time weight prep stays in plain JAX).
# ----------------------------------------------------------------------------
def init_params(key, d_model, num_heads):
    ks = jax.random.split(key, 6)

    def _lin(kw, kb, fan_in, fan_out):
        bound = 1.0 / math.sqrt(fan_in)
        w = jax.random.uniform(kw, (fan_out, fan_in), jnp.float32, -bound, bound)
        b = jax.random.uniform(kb, (fan_out,), jnp.float32, -bound, bound)
        return w, b

    wkv, bkv = _lin(ks[0], ks[1], d_model, 2 * d_model)
    wq, bq = _lin(ks[2], ks[3], d_model, d_model)
    wl, bl = _lin(ks[4], ks[5], d_model, d_model)
    return dict(wkv=wkv, bkv=bkv, wq=wq, bq=bq, wl=wl, bl=bl,
                d_model=d_model, num_heads=num_heads)


def multi_head_cross_attention(params, x, y, mask=None):
    if mask is not None:
        # TODO(synk): additive `mask` path not wired into the kernel.
        raise NotImplementedError("mask is not supported by the Pallas kernel")

    B, S, D = x.shape
    H = params["num_heads"]
    hd = D // H
    assert D % H == 0
    # TODO(synk): in-kernel quirky reshape assumes S % H == 0 (PyTorch allows any S).
    assert S % H == 0

    # De-interleave the kv projection so K / V columns are head-contiguous,
    # keeping them fused as a single (D, 2D) weight: [k heads | v heads].
    wkv_t = params["wkv"].T.reshape(D, H, 2, hd)          # (D_in, H, {k,v}, hd)
    wkv_fused = jnp.concatenate(
        [wkv_t[:, :, 0, :].reshape(D, D), wkv_t[:, :, 1, :].reshape(D, D)], axis=1)
    bkv3 = params["bkv"].reshape(H, 2, hd)
    bkv_fused = jnp.concatenate(
        [bkv3[:, 0, :].reshape(1, D), bkv3[:, 1, :].reshape(1, D)], axis=1)

    # Fold the 1/sqrt(hd) attention scale into the Q projection (one-time O(D^2)).
    scale = 1.0 / math.sqrt(hd)
    wq_scaled = params["wq"].T * scale
    bq_scaled = params["bq"][None, :] * scale

    return fused_mhca(
        x, y,
        wkv_fused, bkv_fused,
        wq_scaled, bq_scaled,
        params["wl"].T, params["bl"][None, :],
        H,
    )


# ----------------------------------------------------------------------------
# Pure-JAX reference (same quirky semantics) for correctness checking.
# ----------------------------------------------------------------------------
def reference(params, x, y):
    B, S, D = x.shape
    H = params["num_heads"]
    hd = D // H
    kv = x @ params["wkv"].T + params["bkv"]
    q = y @ params["wq"].T + params["bq"]
    kv = kv.reshape(B, S, H, 2 * hd).transpose(0, 2, 1, 3)
    q = q.reshape(B, S, H, hd).transpose(0, 2, 1, 3)
    k, v = kv[..., :hd], kv[..., hd:]
    scaled = jnp.einsum("bhqd,bhkd->bhqk", q, k) / math.sqrt(hd)
    attn = jax.nn.softmax(scaled, axis=1)          # legacy implicit dim=1 (heads)
    vals = jnp.einsum("bhqk,bhkd->bhqd", attn, v)
    vals = vals.reshape(B, S, D)                   # quirky reshape, no permute
    return vals @ params["wl"].T + params["bl"]


if __name__ == "__main__":
    B, S, d_model, num_heads = 2, 8, 32, 4

    key = jax.random.PRNGKey(0)
    kp, kx, ky = jax.random.split(key, 3)
    params = init_params(kp, d_model, num_heads)
    x = jax.random.normal(kx, (B, S, d_model), jnp.float32)
    y = jax.random.normal(ky, (B, S, d_model), jnp.float32)

    out = jax.block_until_ready(multi_head_cross_attention(params, x, y))
    ref = jax.block_until_ready(reference(params, x, y))

    np.testing.assert_allclose(np.asarray(out), np.asarray(ref),
                               rtol=1e-5, atol=1e-5)
    print("KERNEL_OK")
</pallas_src>

<mosaic_0001>
module attributes {stable_mosaic.version = 11 : i64} {
  func.func @_mhca_kernel(%arg0: i32, %arg1: i32, %arg2: memref<1x8x32xf32, #tpu.memory_space<vmem>>, %arg3: memref<1x8x32xf32, #tpu.memory_space<vmem>>, %arg4: memref<32x64xf32, #tpu.memory_space<vmem>>, %arg5: memref<1x64xf32, #tpu.memory_space<vmem>>, %arg6: memref<32x32xf32, #tpu.memory_space<vmem>>, %arg7: memref<1x32xf32, #tpu.memory_space<vmem>>, %arg8: memref<32x32xf32, #tpu.memory_space<vmem>>, %arg9: memref<1x32xf32, #tpu.memory_space<vmem>>, %arg10: memref<1x8x32xf32, #tpu.memory_space<vmem>>, %arg11: memref<8x32xf32, #tpu.memory_space<vmem>>, %arg12: memref<4x8x8xf32, #tpu.memory_space<vmem>>, %arg13: memref<8x32xf32, #tpu.memory_space<vmem>>, %arg14: memref<8x32xf32, #tpu.memory_space<vmem>>) attributes {dimension_semantics = [#tpu.dimension_semantics<parallel>, #tpu.dimension_semantics<arbitrary>], iteration_bounds = array<i64: 2, 1>, scalar_prefetch = 0 : i64, scratch_operands = 4 : i64, tpu.core_type = #tpu.core_type<tc>, window_params = [{transform_indices = @transform_0, window_bounds = array<i64: 1, 8, 32>}, {transform_indices = @transform_1, window_bounds = array<i64: 1, 8, 32>}, {pipeline_mode = #tpu.pipeline_mode<synchronous>, transform_indices = @transform_2, window_bounds = array<i64: 32, 64>}, {pipeline_mode = #tpu.pipeline_mode<synchronous>, transform_indices = @transform_3, window_bounds = array<i64: 1, 64>}, {pipeline_mode = #tpu.pipeline_mode<synchronous>, transform_indices = @transform_4, window_bounds = array<i64: 32, 32>}, {pipeline_mode = #tpu.pipeline_mode<synchronous>, transform_indices = @transform_5, window_bounds = array<i64: 1, 32>}, {pipeline_mode = #tpu.pipeline_mode<synchronous>, transform_indices = @transform_6, window_bounds = array<i64: 32, 32>}, {pipeline_mode = #tpu.pipeline_mode<synchronous>, transform_indices = @transform_7, window_bounds = array<i64: 1, 32>}, {transform_indices = @transform_8, window_bounds = array<i64: 1, 8, 32>}]} {
    %c0_i32 = arith.constant 0 : i32
    %0 = arith.cmpi eq, %arg1, %c0_i32 : i32
    %1 = arith.extui %0 : i1 to i32
    %c0_i32_0 = arith.constant 0 : i32
    %2 = arith.cmpi ne, %1, %c0_i32_0 : i32
    scf.if %2 {
      %c0_83 = arith.constant 0 : index
      %c0_84 = arith.constant 0 : index
      %c0_85 = arith.constant 0 : index
      %104 = vector.load %arg3[%c0_83, %c0_84, %c0_85] : memref<1x8x32xf32, #tpu.memory_space<vmem>>, vector<1x8x32xf32>
      %105 = vector.shape_cast %104 : vector<1x8x32xf32> to vector<8x32xf32>
      %c0_86 = arith.constant 0 : index
      %c0_87 = arith.constant 0 : index
      %106 = vector.load %arg6[%c0_86, %c0_87] : memref<32x32xf32, #tpu.memory_space<vmem>>, vector<32x32xf32>
      %cst_88 = arith.constant dense<0.000000e+00> : vector<8x32xf32>
      %107 = tpu.matmul %105, %106, %cst_88 {dimension_numbers = #tpu.dot_dimension_numbers<[1], [0], [0], [1], [0, 0, 1, 1], [], []>} : vector<8x32xf32>, vector<32x32xf32>, vector<8x32xf32> -> vector<8x32xf32>
      %c0_89 = arith.constant 0 : index
      %c0_90 = arith.constant 0 : index
      %108 = vector.load %arg7[%c0_89, %c0_90] : memref<1x32xf32, #tpu.memory_space<vmem>>, vector<1x32xf32>
      %109 = vector.broadcast %108 : vector<1x32xf32> to vector<8x32xf32>
      %110 = arith.addf %107, %109 : vector<8x32xf32>
      %c0_91 = arith.constant 0 : index
      %c0_92 = arith.constant 0 : index
      %111 = vector.load %arg11[%c0_91, %c0_92] : memref<8x32xf32, #tpu.memory_space<vmem>>, vector<8x32xf32>
      tpu.vector_store %arg11[%c0_91, %c0_92], %110 {strides = array<i32>} : memref<8x32xf32, #tpu.memory_space<vmem>>, vector<8x32xf32>,
      %cst_93 = arith.constant 0.000000e+00 : f32
      %112 = vector.broadcast %cst_93 : f32 to vector<8x32xf32>
      %c0_94 = arith.constant 0 : index
      %c0_95 = arith.constant 0 : index
      %113 = vector.load %arg13[%c0_94, %c0_95] : memref<8x32xf32, #tpu.memory_space<vmem>>, vector<8x32xf32>
      tpu.vector_store %arg13[%c0_94, %c0_95], %112 {strides = array<i32>} : memref<8x32xf32, #tpu.memory_space<vmem>>, vector<8x32xf32>,
    } else {
    }
    %c0 = arith.constant 0 : index
    %c0_1 = arith.constant 0 : index
    %c0_2 = arith.constant 0 : index
    %3 = vector.load %arg2[%c0, %c0_1, %c0_2] : memref<1x8x32xf32, #tpu.memory_space<vmem>>, vector<1x8x32xf32>
    %4 = vector.shape_cast %3 : vector<1x8x32xf32> to vector<8x32xf32>
    %c0_3 = arith.constant 0 : index
    %c0_4 = arith.constant 0 : index
    %5 = vector.load %arg4[%c0_3, %c0_4] : memref<32x64xf32, #tpu.memory_space<vmem>>, vector<32x64xf32>
    %cst = arith.constant dense<0.000000e+00> : vector<8x64xf32>
    %6 = tpu.matmul %4, %5, %cst {dimension_numbers = #tpu.dot_dimension_numbers<[1], [0], [0], [1], [0, 0, 1, 1], [], []>} : vector<8x32xf32>, vector<32x64xf32>, vector<8x64xf32> -> vector<8x64xf32>
    %c0_5 = arith.constant 0 : index
    %c0_6 = arith.constant 0 : index
    %7 = vector.load %arg5[%c0_5, %c0_6] : memref<1x64xf32, #tpu.memory_space<vmem>>, vector<1x64xf32>
    %8 = vector.broadcast %7 : vector<1x64xf32> to vector<8x64xf32>
    %9 = arith.addf %6, %8 : vector<8x64xf32>
    %c0_7 = arith.constant 0 : index
    %c0_8 = arith.constant 0 : index
    %10 = vector.load %arg11[%c0_7, %c0_8] : memref<8x32xf32, #tpu.memory_space<vmem>>, vector<8x8xf32>
    %11 = vector.extract_strided_slice %9 {offsets = [0, 0], sizes = [8, 8], strides = [1, 1]} : vector<8x64xf32> to vector<8x8xf32>
    %cst_9 = arith.constant dense<0.000000e+00> : vector<8x8xf32>
    %12 = tpu.matmul %10, %11, %cst_9 {dimension_numbers = #tpu.dot_dimension_numbers<[1], [1], [0], [0], [0, 0, 1, 0], [], []>} : vector<8x8xf32>, vector<8x8xf32>, vector<8x8xf32> -> vector<8x8xf32>
    %c0_10 = arith.constant 0 : index
    %c0_11 = arith.constant 0 : index
    %c0_12 = arith.constant 0 : index
    %13 = vector.load %arg12[%c0_10, %c0_11, %c0_12] : memref<4x8x8xf32, #tpu.memory_space<vmem>>, vector<1x8x8xf32>
    %14 = vector.shape_cast %13 : vector<1x8x8xf32> to vector<8x8xf32>
    %15 = vector.shape_cast %12 : vector<8x8xf32> to vector<1x8x8xf32>
    tpu.vector_store %arg12[%c0_10, %c0_11, %c0_12], %15 {strides = array<i32>} : memref<4x8x8xf32, #tpu.memory_space<vmem>>, vector<1x8x8xf32>,
    %c0_13 = arith.constant 0 : index
    %c8 = arith.constant 8 : index
    %16 = vector.load %arg11[%c0_13, %c8] : memref<8x32xf32, #tpu.memory_space<vmem>>, vector<8x8xf32>
    %17 = vector.extract_strided_slice %9 {offsets = [0, 8], sizes = [8, 8], strides = [1, 1]} : vector<8x64xf32> to vector<8x8xf32>
    %cst_14 = arith.constant dense<0.000000e+00> : vector<8x8xf32>
    %18 = tpu.matmul %16, %17, %cst_14 {dimension_numbers = #tpu.dot_dimension_numbers<[1], [1], [0], [0], [0, 0, 1, 0], [], []>} : vector<8x8xf32>, vector<8x8xf32>, vector<8x8xf32> -> vector<8x8xf32>
    %c1 = arith.constant 1 : index
    %c0_15 = arith.constant 0 : index
    %c0_16 = arith.constant 0 : index
    %19 = vector.load %arg12[%c1, %c0_15, %c0_16] : memref<4x8x8xf32, #tpu.memory_space<vmem>>, vector<1x8x8xf32>
    %20 = vector.shape_cast %19 : vector<1x8x8xf32> to vector<8x8xf32>
    %21 = vector.shape_cast %18 : vector<8x8xf32> to vector<1x8x8xf32>
    tpu.vector_store %arg12[%c1, %c0_15, %c0_16], %21 {strides = array<i32>} : memref<4x8x8xf32, #tpu.memory_space<vmem>>, vector<1x8x8xf32>,
    %22 = arith.maximumf %12, %18 : vector<8x8xf32>
    %c0_17 = arith.constant 0 : index
    %c16 = arith.constant 16 : index
    %23 = vector.load %arg11[%c0_17, %c16] : memref<8x32xf32, #tpu.memory_space<vmem>>, vector<8x8xf32>
    %24 = vector.extract_strided_slice %9 {offsets = [0, 16], sizes = [8, 8], strides = [1, 1]} : vector<8x64xf32> to vector<8x8xf32>
    %cst_18 = arith.constant dense<0.000000e+00> : vector<8x8xf32>
    %25 = tpu.matmul %23, %24, %cst_18 {dimension_numbers = #tpu.dot_dimension_numbers<[1], [1], [0], [0], [0, 0, 1, 0], [], []>} : vector<8x8xf32>, vector<8x8xf32>, vector<8x8xf32> -> vector<8x8xf32>
    %c2 = arith.constant 2 : index
    %c0_19 = arith.constant 0 : index
    %c0_20 = arith.constant 0 : index
    %26 = vector.load %arg12[%c2, %c0_19, %c0_20] : memref<4x8x8xf32, #tpu.memory_space<vmem>>, vector<1x8x8xf32>
    %27 = vector.shape_cast %26 : vector<1x8x8xf32> to vector<8x8xf32>
    %28 = vector.shape_cast %25 : vector<8x8xf32> to vector<1x8x8xf32>
    tpu.vector_store %arg12[%c2, %c0_19, %c0_20], %28 {strides = array<i32>} : memref<4x8x8xf32, #tpu.memory_space<vmem>>, vector<1x8x8xf32>,
    %29 = arith.maximumf %22, %25 : vector<8x8xf32>
    %c0_21 = arith.constant 0 : index
    %c24 = arith.constant 24 : index
    %30 = vector.load %arg11[%c0_21, %c24] : memref<8x32xf32, #tpu.memory_space<vmem>>, vector<8x8xf32>
    %31 = vector.extract_strided_slice %9 {offsets = [0, 24], sizes = [8, 8], strides = [1, 1]} : vector<8x64xf32> to vector<8x8xf32>
    %cst_22 = arith.constant dense<0.000000e+00> : vector<8x8xf32>
    %32 = tpu.matmul %30, %31, %cst_22 {dimension_numbers = #tpu.dot_dimension_numbers<[1], [1], [0], [0], [0, 0, 1, 0], [], []>} : vector<8x8xf32>, vector<8x8xf32>, vector<8x8xf32> -> vector<8x8xf32>
    %c3 = arith.constant 3 : index
    %c0_23 = arith.constant 0 : index
    %c0_24 = arith.constant 0 : index
    %33 = vector.load %arg12[%c3, %c0_23, %c0_24] : memref<4x8x8xf32, #tpu.memory_space<vmem>>, vector<1x8x8xf32>
    %34 = vector.shape_cast %33 : vector<1x8x8xf32> to vector<8x8xf32>
    %35 = vector.shape_cast %32 : vector<8x8xf32> to vector<1x8x8xf32>
    tpu.vector_store %arg12[%c3, %c0_23, %c0_24], %35 {strides = array<i32>} : memref<4x8x8xf32, #tpu.memory_space<vmem>>, vector<1x8x8xf32>,
    %36 = arith.maximumf %29, %32 : vector<8x8xf32>
    %c0_25 = arith.constant 0 : index
    %c0_26 = arith.constant 0 : index
    %c0_27 = arith.constant 0 : index
    %37 = vector.load %arg12[%c0_25, %c0_26, %c0_27] : memref<4x8x8xf32, #tpu.memory_space<vmem>>, vector<1x8x8xf32>
    %38 = vector.shape_cast %37 : vector<1x8x8xf32> to vector<8x8xf32>
    %39 = arith.subf %38, %36 : vector<8x8xf32>
    %40 = math.exp %39 : vector<8x8xf32>
    %c0_28 = arith.constant 0 : index
    %c0_29 = arith.constant 0 : index
    %c0_30 = arith.constant 0 : index
    %41 = vector.load %arg12[%c0_28, %c0_29, %c0_30] : memref<4x8x8xf32, #tpu.memory_space<vmem>>, vector<1x8x8xf32>
    %42 = vector.shape_cast %41 : vector<1x8x8xf32> to vector<8x8xf32>
    %43 = vector.shape_cast %40 : vector<8x8xf32> to vector<1x8x8xf32>
    tpu.vector_store %arg12[%c0_28, %c0_29, %c0_30], %43 {strides = array<i32>} : memref<4x8x8xf32, #tpu.memory_space<vmem>>, vector<1x8x8xf32>,
    %c1_31 = arith.constant 1 : index
    %c0_32 = arith.constant 0 : index
    %c0_33 = arith.constant 0 : index
    %44 = vector.load %arg12[%c1_31, %c0_32, %c0_33] : memref<4x8x8xf32, #tpu.memory_space<vmem>>, vector<1x8x8xf32>
    %45 = vector.shape_cast %44 : vector<1x8x8xf32> to vector<8x8xf32>
    %46 = arith.subf %45, %36 : vector<8x8xf32>
    %47 = math.exp %46 : vector<8x8xf32>
    %c1_34 = arith.constant 1 : index
    %c0_35 = arith.constant 0 : index
    %c0_36 = arith.constant 0 : index
    %48 = vector.load %arg12[%c1_34, %c0_35, %c0_36] : memref<4x8x8xf32, #tpu.memory_space<vmem>>, vector<1x8x8xf32>
    %49 = vector.shape_cast %48 : vector<1x8x8xf32> to vector<8x8xf32>
    %50 = vector.shape_cast %47 : vector<8x8xf32> to vector<1x8x8xf32>
    tpu.vector_store %arg12[%c1_34, %c0_35, %c0_36], %50 {strides = array<i32>} : memref<4x8x8xf32, #tpu.memory_space<vmem>>, vector<1x8x8xf32>,
    %51 = arith.addf %40, %47 : vector<8x8xf32>
    %c2_37 = arith.constant 2 : index
    %c0_38 = arith.constant 0 : index
    %c0_39 = arith.constant 0 : index
    %52 = vector.load %arg12[%c2_37, %c0_38, %c0_39] : memref<4x8x8xf32, #tpu.memory_space<vmem>>, vector<1x8x8xf32>
    %53 = vector.shape_cast %52 : vector<1x8x8xf32> to vector<8x8xf32>
    %54 = arith.subf %53, %36 : vector<8x8xf32>
    %55 = math.exp %54 : vector<8x8xf32>
    %c2_40 = arith.constant 2 : index
    %c0_41 = arith.constant 0 : index
    %c0_42 = arith.constant 0 : index
    %56 = vector.load %arg12[%c2_40, %c0_41, %c0_42] : memref<4x8x8xf32, #tpu.memory_space<vmem>>, vector<1x8x8xf32>
    %57 = vector.shape_cast %56 : vector<1x8x8xf32> to vector<8x8xf32>
    %58 = vector.shape_cast %55 : vector<8x8xf32> to vector<1x8x8xf32>
    tpu.vector_store %arg12[%c2_40, %c0_41, %c0_42], %58 {strides = array<i32>} : memref<4x8x8xf32, #tpu.memory_space<vmem>>, vector<1x8x8xf32>,
    %59 = arith.addf %51, %55 : vector<8x8xf32>
    %c3_43 = arith.constant 3 : index
    %c0_44 = arith.constant 0 : index
    %c0_45 = arith.constant 0 : index
    %60 = vector.load %arg12[%c3_43, %c0_44, %c0_45] : memref<4x8x8xf32, #tpu.memory_space<vmem>>, vector<1x8x8xf32>
    %61 = vector.shape_cast %60 : vector<1x8x8xf32> to vector<8x8xf32>
    %62 = arith.subf %61, %36 : vector<8x8xf32>
    %63 = math.exp %62 : vector<8x8xf32>
    %c3_46 = arith.constant 3 : index
    %c0_47 = arith.constant 0 : index
    %c0_48 = arith.constant 0 : index
    %64 = vector.load %arg12[%c3_46, %c0_47, %c0_48] : memref<4x8x8xf32, #tpu.memory_space<vmem>>, vector<1x8x8xf32>
    %65 = vector.shape_cast %64 : vector<1x8x8xf32> to vector<8x8xf32>
    %66 = vector.shape_cast %63 : vector<8x8xf32> to vector<1x8x8xf32>
    tpu.vector_store %arg12[%c3_46, %c0_47, %c0_48], %66 {strides = array<i32>} : memref<4x8x8xf32, #tpu.memory_space<vmem>>, vector<1x8x8xf32>,
    %67 = arith.addf %59, %63 : vector<8x8xf32>
    %68 = tpu.reciprocal %67 : vector<8x8xf32> -> vector<8x8xf32>
    %69 = vector.extract_strided_slice %9 {offsets = [0, 32], sizes = [8, 8], strides = [1, 1]} : vector<8x64xf32> to vector<8x8xf32>
    %c0_49 = arith.constant 0 : index
    %c0_50 = arith.constant 0 : index
    %c0_51 = arith.constant 0 : index
    %70 = vector.load %arg12[%c0_49, %c0_50, %c0_51] : memref<4x8x8xf32, #tpu.memory_space<vmem>>, vector<1x8x8xf32>
    %71 = vector.shape_cast %70 : vector<1x8x8xf32> to vector<8x8xf32>
    %72 = arith.mulf %71, %68 : vector<8x8xf32>
    %c0_52 = arith.constant 0 : index
    %c0_53 = arith.constant 0 : index
    %73 = vector.load %arg13[%c0_52, %c0_53] : memref<8x32xf32, #tpu.memory_space<vmem>>, vector<8x8xf32>
    %cst_54 = arith.constant dense<0.000000e+00> : vector<8x8xf32>
    %74 = tpu.matmul %72, %69, %cst_54 {dimension_numbers = #tpu.dot_dimension_numbers<[1], [0], [0], [1], [0, 0, 1, 1], [], []>} : vector<8x8xf32>, vector<8x8xf32>, vector<8x8xf32> -> vector<8x8xf32>
    %75 = arith.addf %73, %74 : vector<8x8xf32>
    %c0_55 = arith.constant 0 : index
    %c0_56 = arith.constant 0 : index
    %76 = vector.load %arg13[%c0_55, %c0_56] : memref<8x32xf32, #tpu.memory_space<vmem>>, vector<8x8xf32>
    tpu.vector_store %arg13[%c0_55, %c0_56], %75 {strides = array<i32>} : memref<8x32xf32, #tpu.memory_space<vmem>>, vector<8x8xf32>,
    %77 = vector.extract_strided_slice %9 {offsets = [0, 40], sizes = [8, 8], strides = [1, 1]} : vector<8x64xf32> to vector<8x8xf32>
    %c1_57 = arith.constant 1 : index
    %c0_58 = arith.constant 0 : index
    %c0_59 = arith.constant 0 : index
    %78 = vector.load %arg12[%c1_57, %c0_58, %c0_59] : memref<4x8x8xf32, #tpu.memory_space<vmem>>, vector<1x8x8xf32>
    %79 = vector.shape_cast %78 : vector<1x8x8xf32> to vector<8x8xf32>
    %80 = arith.mulf %79, %68 : vector<8x8xf32>
    %c0_60 = arith.constant 0 : index
    %c8_61 = arith.constant 8 : index
    %81 = vector.load %arg13[%c0_60, %c8_61] : memref<8x32xf32, #tpu.memory_space<vmem>>, vector<8x8xf32>
    %cst_62 = arith.constant dense<0.000000e+00> : vector<8x8xf32>
    %82 = tpu.matmul %80, %77, %cst_62 {dimension_numbers = #tpu.dot_dimension_numbers<[1], [0], [0], [1], [0, 0, 1, 1], [], []>} : vector<8x8xf32>, vector<8x8xf32>, vector<8x8xf32> -> vector<8x8xf32>
    %83 = arith.addf %81, %82 : vector<8x8xf32>
    %c0_63 = arith.constant 0 : index
    %c8_64 = arith.constant 8 : index
    %84 = vector.load %arg13[%c0_63, %c8_64] : memref<8x32xf32, #tpu.memory_space<vmem>>, vector<8x8xf32>
    tpu.vector_store %arg13[%c0_63, %c8_64], %83 {strides = array<i32>} : memref<8x32xf32, #tpu.memory_space<vmem>>, vector<8x8xf32>,
    %85 = vector.extract_strided_slice %9 {offsets = [0, 48], sizes = [8, 8], strides = [1, 1]} : vector<8x64xf32> to vector<8x8xf32>
    %c2_65 = arith.constant 2 : index
    %c0_66 = arith.constant 0 : index
    %c0_67 = arith.constant 0 : index
    %86 = vector.load %arg12[%c2_65, %c0_66, %c0_67] : memref<4x8x8xf32, #tpu.memory_space<vmem>>, vector<1x8x8xf32>
    %87 = vector.shape_cast %86 : vector<1x8x8xf32> to vector<8x8xf32>
    %88 = arith.mulf %87, %68 : vector<8x8xf32>
    %c0_68 = arith.constant 0 : index
    %c16_69 = arith.constant 16 : index
    %89 = vector.load %arg13[%c0_68, %c16_69] : memref<8x32xf32, #tpu.memory_space<vmem>>, vector<8x8xf32>
    %cst_70 = arith.constant dense<0.000000e+00> : vector<8x8xf32>
    %90 = tpu.matmul %88, %85, %cst_70 {dimension_numbers = #tpu.dot_dimension_numbers<[1], [0], [0], [1], [0, 0, 1, 1], [], []>} : vector<8x8xf32>, vector<8x8xf32>, vector<8x8xf32> -> vector<8x8xf32>
    %91 = arith.addf %89, %90 : vector<8x8xf32>
    %c0_71 = arith.constant 0 : index
    %c16_72 = arith.constant 16 : index
    %92 = vector.load %arg13[%c0_71, %c16_72] : memref<8x32xf32, #tpu.memory_space<vmem>>, vector<8x8xf32>
    tpu.vector_store %arg13[%c0_71, %c16_72], %91 {strides = array<i32>} : memref<8x32xf32, #tpu.memory_space<vmem>>, vector<8x8xf32>,
    %93 = vector.extract_strided_slice %9 {offsets = [0, 56], sizes = [8, 8], strides = [1, 1]} : vector<8x64xf32> to vector<8x8xf32>
    %c3_73 = arith.constant 3 : index
    %c0_74 = arith.constant 0 : index
    %c0_75 = arith.constant 0 : index
    %94 = vector.load %arg12[%c3_73, %c0_74, %c0_75] : memref<4x8x8xf32, #tpu.memory_space<vmem>>, vector<1x8x8xf32>
    %95 = vector.shape_cast %94 : vector<1x8x8xf32> to vector<8x8xf32>
    %96 = arith.mulf %95, %68 : vector<8x8xf32>
    %c0_76 = arith.constant 0 : index
    %c24_77 = arith.constant 24 : index
    %97 = vector.load %arg13[%c0_76, %c24_77] : memref<8x32xf32, #tpu.memory_space<vmem>>, vector<8x8xf32>
    %cst_78 = arith.constant dense<0.000000e+00> : vector<8x8xf32>
    %98 = tpu.matmul %96, %93, %cst_78 {dimension_numbers = #tpu.dot_dimension_numbers<[1], [0], [0], [1], [0, 0, 1, 1], [], []>} : vector<8x8xf32>, vector<8x8xf32>, vector<8x8xf32> -> vector<8x8xf32>
    %99 = arith.addf %97, %98 : vector<8x8xf32>
    %c0_79 = arith.constant 0 : index
    %c24_80 = arith.constant 24 : index
    %100 = vector.load %arg13[%c0_79, %c24_80] : memref<8x32xf32, #tpu.memory_space<vmem>>, vector<8x8xf32>
    tpu.vector_store %arg13[%c0_79, %c24_80], %99 {strides = array<i32>} : memref<8x32xf32, #tpu.memory_space<vmem>>, vector<8x8xf32>,
    %c0_i32_81 = arith.constant 0 : i32
    %101 = arith.cmpi eq, %arg1, %c0_i32_81 : i32
    %102 = arith.extui %101 : i1 to i32
    %c0_i32_82 = arith.constant 0 : i32
    %103 = arith.cmpi ne, %102, %c0_i32_82 : i32
    scf.if %103 {
      %c0_83 = arith.constant 0 : index
      %c0_84 = arith.constant 0 : index
      %104 = vector.load %arg13[%c0_83, %c0_84] : memref<8x32xf32, #tpu.memory_space<vmem>>, vector<8x32xf32>
      %105 = vector.shape_cast %104 : vector<8x32xf32> to vector<2x4x32xf32>
      %106 = vector.extract_strided_slice %105 {offsets = [0, 0, 0], sizes = [2, 1, 8], strides = [1, 1, 1]} : vector<2x4x32xf32> to vector<2x1x8xf32>
      %107 = vector.shape_cast %106 : vector<2x1x8xf32> to vector<2x8xf32>
      %c0_85 = arith.constant 0 : index
      %c0_86 = arith.constant 0 : index
      %108 = vector.load %arg14[%c0_85, %c0_86] : memref<8x32xf32, #tpu.memory_space<vmem>>, vector<2x8xf32>
      tpu.vector_store %arg14[%c0_85, %c0_86], %107 {strides = array<i32>} : memref<8x32xf32, #tpu.memory_space<vmem>>, vector<2x8xf32>,
      %109 = vector.extract_strided_slice %105 {offsets = [0, 1, 0], sizes = [2, 1, 8], strides = [1, 1, 1]} : vector<2x4x32xf32> to vector<2x1x8xf32>
      %110 = vector.shape_cast %109 : vector<2x1x8xf32> to vector<2x8xf32>
      %c0_87 = arith.constant 0 : index
      %c8_88 = arith.constant 8 : index
      %111 = vector.load %arg14[%c0_87, %c8_88] : memref<8x32xf32, #tpu.memory_space<vmem>>, vector<2x8xf32>
      tpu.vector_store %arg14[%c0_87, %c8_88], %110 {strides = array<i32>} : memref<8x32xf32, #tpu.memory_space<vmem>>, vector<2x8xf32>,
      %112 = vector.extract_strided_slice %105 {offsets = [0, 2, 0], sizes = [2, 1, 8], strides = [1, 1, 1]} : vector<2x4x32xf32> to vector<2x1x8xf32>
      %113 = vector.shape_cast %112 : vector<2x1x8xf32> to vector<2x8xf32>
      %c0_89 = arith.constant 0 : index
      %c16_90 = arith.constant 16 : index
      %114 = vector.load %arg14[%c0_89, %c16_90] : memref<8x32xf32, #tpu.memory_space<vmem>>, vector<2x8xf32>
      tpu.vector_store %arg14[%c0_89, %c16_90], %113 {strides = array<i32>} : memref<8x32xf32, #tpu.memory_space<vmem>>, vector<2x8xf32>,
      %115 = vector.extract_strided_slice %105 {offsets = [0, 3, 0], sizes = [2, 1, 8], strides = [1, 1, 1]} : vector<2x4x32xf32> to vector<2x1x8xf32>
      %116 = vector.shape_cast %115 : vector<2x1x8xf32> to vector<2x8xf32>
      %c0_91 = arith.constant 0 : index
      %c24_92 = arith.constant 24 : index
      %117 = vector.load %arg14[%c0_91, %c24_92] : memref<8x32xf32, #tpu.memory_space<vmem>>, vector<2x8xf32>
      tpu.vector_store %arg14[%c0_91, %c24_92], %116 {strides = array<i32>} : memref<8x32xf32, #tpu.memory_space<vmem>>, vector<2x8xf32>,
      %118 = vector.extract_strided_slice %105 {offsets = [0, 0, 8], sizes = [2, 1, 8], strides = [1, 1, 1]} : vector<2x4x32xf32> to vector<2x1x8xf32>
      %119 = vector.shape_cast %118 : vector<2x1x8xf32> to vector<2x8xf32>
      %c2_93 = arith.constant 2 : index
      %c0_94 = arith.constant 0 : index
      %120 = vector.load %arg14[%c2_93, %c0_94] : memref<8x32xf32, #tpu.memory_space<vmem>>, vector<2x8xf32>
      tpu.vector_store %arg14[%c2_93, %c0_94], %119 {strides = array<i32>} : memref<8x32xf32, #tpu.memory_space<vmem>>, vector<2x8xf32>,
      %121 = vector.extract_strided_slice %105 {offsets = [0, 1, 8], sizes = [2, 1, 8], strides = [1, 1, 1]} : vector<2x4x32xf32> to vector<2x1x8xf32>
      %122 = vector.shape_cast %121 : vector<2x1x8xf32> to vector<2x8xf32>
      %c2_95 = arith.constant 2 : index
      %c8_96 = arith.constant 8 : index
      %123 = vector.load %arg14[%c2_95, %c8_96] : memref<8x32xf32, #tpu.memory_space<vmem>>, vector<2x8xf32>
      tpu.vector_store %arg14[%c2_95, %c8_96], %122 {strides = array<i32>} : memref<8x32xf32, #tpu.memory_space<vmem>>, vector<2x8xf32>,
      %124 = vector.extract_strided_slice %105 {offsets = [0, 2, 8], sizes = [2, 1, 8], strides = [1, 1, 1]} : vector<2x4x32xf32> to vector<2x1x8xf32>
      %125 = vector.shape_cast %124 : vector<2x1x8xf32> to vector<2x8xf32>
      %c2_97 = arith.constant 2 : index
      %c16_98 = arith.constant 16 : index
      %126 = vector.load %arg14[%c2_97, %c16_98] : memref<8x32xf32, #tpu.memory_space<vmem>>, vector<2x8xf32>
      tpu.vector_store %arg14[%c2_97, %c16_98], %125 {strides = array<i32>} : memref<8x32xf32, #tpu.memory_space<vmem>>, vector<2x8xf32>,
      %127 = vector.extract_strided_slice %105 {offsets = [0, 3, 8], sizes = [2, 1, 8], strides = [1, 1, 1]} : vector<2x4x32xf32> to vector<2x1x8xf32>
      %128 = vector.shape_cast %127 : vector<2x1x8xf32> to vector<2x8xf32>
      %c2_99 = arith.constant 2 : index
      %c24_100 = arith.constant 24 : index
      %129 = vector.load %arg14[%c2_99, %c24_100] : memref<8x32xf32, #tpu.memory_space<vmem>>, vector<2x8xf32>
      tpu.vector_store %arg14[%c2_99, %c24_100], %128 {strides = array<i32>} : memref<8x32xf32, #tpu.memory_space<vmem>>, vector<2x8xf32>,
      %130 = vector.extract_strided_slice %105 {offsets = [0, 0, 16], sizes = [2, 1, 8], strides = [1, 1, 1]} : vector<2x4x32xf32> to vector<2x1x8xf32>
      %131 = vector.shape_cast %130 : vector<2x1x8xf32> to vector<2x8xf32>
      %c4 = arith.constant 4 : index
      %c0_101 = arith.constant 0 : index
      %132 = vector.load %arg14[%c4, %c0_101] : memref<8x32xf32, #tpu.memory_space<vmem>>, vector<2x8xf32>
      tpu.vector_store %arg14[%c4, %c0_101], %131 {strides = array<i32>} : memref<8x32xf32, #tpu.memory_space<vmem>>, vector<2x8xf32>,
      %133 = vector.extract_strided_slice %105 {offsets = [0, 1, 16], sizes = [2, 1, 8], strides = [1, 1, 1]} : vector<2x4x32xf32> to vector<2x1x8xf32>
      %134 = vector.shape_cast %133 : vector<2x1x8xf32> to vector<2x8xf32>
      %c4_102 = arith.constant 4 : index
      %c8_103 = arith.constant 8 : index
      %135 = vector.load %arg14[%c4_102, %c8_103] : memref<8x32xf32, #tpu.memory_space<vmem>>, vector<2x8xf32>
      tpu.vector_store %arg14[%c4_102, %c8_103], %134 {strides = array<i32>} : memref<8x32xf32, #tpu.memory_space<vmem>>, vector<2x8xf32>,
      %136 = vector.extract_strided_slice %105 {offsets = [0, 2, 16], sizes = [2, 1, 8], strides = [1, 1, 1]} : vector<2x4x32xf32> to vector<2x1x8xf32>
      %137 = vector.shape_cast %136 : vector<2x1x8xf32> to vector<2x8xf32>
      %c4_104 = arith.constant 4 : index
      %c16_105 = arith.constant 16 : index
      %138 = vector.load %arg14[%c4_104, %c16_105] : memref<8x32xf32, #tpu.memory_space<vmem>>, vector<2x8xf32>
      tpu.vector_store %arg14[%c4_104, %c16_105], %137 {strides = array<i32>} : memref<8x32xf32, #tpu.memory_space<vmem>>, vector<2x8xf32>,
      %139 = vector.extract_strided_slice %105 {offsets = [0, 3, 16], sizes = [2, 1, 8], strides = [1, 1, 1]} : vector<2x4x32xf32> to vector<2x1x8xf32>
      %140 = vector.shape_cast %139 : vector<2x1x8xf32> to vector<2x8xf32>
      %c4_106 = arith.constant 4 : index
      %c24_107 = arith.constant 24 : index
      %141 = vector.load %arg14[%c4_106, %c24_107] : memref<8x32xf32, #tpu.memory_space<vmem>>, vector<2x8xf32>
      tpu.vector_store %arg14[%c4_106, %c24_107], %140 {strides = array<i32>} : memref<8x32xf32, #tpu.memory_space<vmem>>, vector<2x8xf32>,
      %142 = vector.extract_strided_slice %105 {offsets = [0, 0, 24], sizes = [2, 1, 8], strides = [1, 1, 1]} : vector<2x4x32xf32> to vector<2x1x8xf32>
      %143 = vector.shape_cast %142 : vector<2x1x8xf32> to vector<2x8xf32>
      %c6 = arith.constant 6 : index
      %c0_108 = arith.constant 0 : index
      %144 = vector.load %arg14[%c6, %c0_108] : memref<8x32xf32, #tpu.memory_space<vmem>>, vector<2x8xf32>
      tpu.vector_store %arg14[%c6, %c0_108], %143 {strides = array<i32>} : memref<8x32xf32, #tpu.memory_space<vmem>>, vector<2x8xf32>,
      %145 = vector.extract_strided_slice %105 {offsets = [0, 1, 24], sizes = [2, 1, 8], strides = [1, 1, 1]} : vector<2x4x32xf32> to vector<2x1x8xf32>
      %146 = vector.shape_cast %145 : vector<2x1x8xf32> to vector<2x8xf32>
      %c6_109 = arith.constant 6 : index
      %c8_110 = arith.constant 8 : index
      %147 = vector.load %arg14[%c6_109, %c8_110] : memref<8x32xf32, #tpu.memory_space<vmem>>, vector<2x8xf32>
      tpu.vector_store %arg14[%c6_109, %c8_110], %146 {strides = array<i32>} : memref<8x32xf32, #tpu.memory_space<vmem>>, vector<2x8xf32>,
      %148 = vector.extract_strided_slice %105 {offsets = [0, 2, 24], sizes = [2, 1, 8], strides = [1, 1, 1]} : vector<2x4x32xf32> to vector<2x1x8xf32>
      %149 = vector.shape_cast %148 : vector<2x1x8xf32> to vector<2x8xf32>
      %c6_111 = arith.constant 6 : index
      %c16_112 = arith.constant 16 : index
      %150 = vector.load %arg14[%c6_111, %c16_112] : memref<8x32xf32, #tpu.memory_space<vmem>>, vector<2x8xf32>
      tpu.vector_store %arg14[%c6_111, %c16_112], %149 {strides = array<i32>} : memref<8x32xf32, #tpu.memory_space<vmem>>, vector<2x8xf32>,
      %151 = vector.extract_strided_slice %105 {offsets = [0, 3, 24], sizes = [2, 1, 8], strides = [1, 1, 1]} : vector<2x4x32xf32> to vector<2x1x8xf32>
      %152 = vector.shape_cast %151 : vector<2x1x8xf32> to vector<2x8xf32>
      %c6_113 = arith.constant 6 : index
      %c24_114 = arith.constant 24 : index
      %153 = vector.load %arg14[%c6_113, %c24_114] : memref<8x32xf32, #tpu.memory_space<vmem>>, vector<2x8xf32>
      tpu.vector_store %arg14[%c6_113, %c24_114], %152 {strides = array<i32>} : memref<8x32xf32, #tpu.memory_space<vmem>>, vector<2x8xf32>,
      %c0_115 = arith.constant 0 : index
      %c0_116 = arith.constant 0 : index
      %154 = vector.load %arg14[%c0_115, %c0_116] : memref<8x32xf32, #tpu.memory_space<vmem>>, vector<8x32xf32>
      %c0_117 = arith.constant 0 : index
      %c0_118 = arith.constant 0 : index
      %155 = vector.load %arg8[%c0_117, %c0_118] : memref<32x32xf32, #tpu.memory_space<vmem>>, vector<32x32xf32>
      %cst_119 = arith.constant dense<0.000000e+00> : vector<8x32xf32>
      %156 = tpu.matmul %154, %155, %cst_119 {dimension_numbers = #tpu.dot_dimension_numbers<[1], [0], [0], [1], [0, 0, 1, 1], [], []>} : vector<8x32xf32>, vector<32x32xf32>, vector<8x32xf32> -> vector<8x32xf32>
      %c0_120 = arith.constant 0 : index
      %c0_121 = arith.constant 0 : index
      %157 = vector.load %arg9[%c0_120, %c0_121] : memref<1x32xf32, #tpu.memory_space<vmem>>, vector<1x32xf32>
      %158 = vector.broadcast %157 : vector<1x32xf32> to vector<8x32xf32>
      %159 = arith.addf %156, %158 : vector<8x32xf32>
      %c0_122 = arith.constant 0 : index
      %c0_123 = arith.constant 0 : index
      %c0_124 = arith.constant 0 : index
      %160 = vector.load %arg10[%c0_122, %c0_123, %c0_124] : memref<1x8x32xf32, #tpu.memory_space<vmem>>, vector<1x8x32xf32>
      %161 = vector.shape_cast %160 : vector<1x8x32xf32> to vector<8x32xf32>
      %162 = vector.shape_cast %159 : vector<8x32xf32> to vector<1x8x32xf32>
      tpu.vector_store %arg10[%c0_122, %c0_123, %c0_124], %162 {strides = array<i32>} : memref<1x8x32xf32, #tpu.memory_space<vmem>>, vector<1x8x32xf32>,
    } else {
    }
    return
  }
  func.func @transform_0(%arg0: i32, %arg1: i32) -> (i32, i32, i32) {
    %c0_i32 = arith.constant 0 : i32
    %c0_i32_0 = arith.constant 0 : i32
    return %arg0, %arg1, %c0_i32 : i32, i32, i32
  }
  func.func @transform_1(%arg0: i32, %arg1: i32) -> (i32, i32, i32) {
    %c0_i32 = arith.constant 0 : i32
    %c0_i32_0 = arith.constant 0 : i32
    %c0_i32_1 = arith.constant 0 : i32
    return %arg0, %c0_i32, %c0_i32_0 : i32, i32, i32
  }
  func.func @transform_2(%arg0: i32, %arg1: i32) -> (i32, i32) {
    %c0_i32 = arith.constant 0 : i32
    %c0_i32_0 = arith.constant 0 : i32
    %c0_i32_1 = arith.constant 0 : i32
    return %c0_i32, %c0_i32_0 : i32, i32
  }
  func.func @transform_3(%arg0: i32, %arg1: i32) -> (i32, i32) {
    %c0_i32 = arith.constant 0 : i32
    %c0_i32_0 = arith.constant 0 : i32
    %c0_i32_1 = arith.constant 0 : i32
    return %c0_i32, %c0_i32_0 : i32, i32
  }
  func.func @transform_4(%arg0: i32, %arg1: i32) -> (i32, i32) {
    %c0_i32 = arith.constant 0 : i32
    %c0_i32_0 = arith.constant 0 : i32
    %c0_i32_1 = arith.constant 0 : i32
    return %c0_i32, %c0_i32_0 : i32, i32
  }
  func.func @transform_5(%arg0: i32, %arg1: i32) -> (i32, i32) {
    %c0_i32 = arith.constant 0 : i32
    %c0_i32_0 = arith.constant 0 : i32
    %c0_i32_1 = arith.constant 0 : i32
    return %c0_i32, %c0_i32_0 : i32, i32
  }
  func.func @transform_6(%arg0: i32, %arg1: i32) -> (i32, i32) {
    %c0_i32 = arith.constant 0 : i32
    %c0_i32_0 = arith.constant 0 : i32
    %c0_i32_1 = arith.constant 0 : i32
    return %c0_i32, %c0_i32_0 : i32, i32
  }
  func.func @transform_7(%arg0: i32, %arg1: i32) -> (i32, i32) {
    %c0_i32 = arith.constant 0 : i32
    %c0_i32_0 = arith.constant 0 : i32
    %c0_i32_1 = arith.constant 0 : i32
    return %c0_i32, %c0_i32_0 : i32, i32
  }
  func.func @transform_8(%arg0: i32, %arg1: i32) -> (i32, i32, i32) {
    %c0_i32 = arith.constant 0 : i32
    %c0_i32_0 = arith.constant 0 : i32
    %c0_i32_1 = arith.constant 0 : i32
    return %arg0, %c0_i32, %c0_i32_0 : i32, i32, i32
  }
}

module attributes {stable_mosaic.version = 11 : i64} {
  func.func @_mhca_kernel(%arg0: i32, %arg1: i32, %arg2: memref<1x8x32xf32, #tpu.memory_space<vmem>>, %arg3: memref<1x8x32xf32, #tpu.memory_space<vmem>>, %arg4: memref<32x64xf32, #tpu.memory_space<vmem>>, %arg5: memref<1x64xf32, #tpu.memory_space<vmem>>, %arg6: memref<32x32xf32, #tpu.memory_space<vmem>>, %arg7: memref<1x32xf32, #tpu.memory_space<vmem>>, %arg8: memref<32x32xf32, #tpu.memory_space<vmem>>, %arg9: memref<1x32xf32, #tpu.memory_space<vmem>>, %arg10: memref<1x8x32xf32, #tpu.memory_space<vmem>>, %arg11: memref<8x32xf32, #tpu.memory_space<vmem>>, %arg12: memref<4x8x8xf32, #tpu.memory_space<vmem>>, %arg13: memref<8x32xf32, #tpu.memory_space<vmem>>, %arg14: memref<8x32xf32, #tpu.memory_space<vmem>>) attributes {dimension_semantics = [#tpu.dimension_semantics<parallel>, #tpu.dimension_semantics<arbitrary>], iteration_bounds = array<i64: 2, 1>, scalar_prefetch = 0 : i64, scratch_operands = 4 : i64, tpu.core_type = #tpu.core_type<tc>, window_params = [{transform_indices = @transform_0, window_bounds = array<i64: 1, 8, 32>}, {transform_indices = @transform_1, window_bounds = array<i64: 1, 8, 32>}, {pipeline_mode = #tpu.pipeline_mode<synchronous>, transform_indices = @transform_2, window_bounds = array<i64: 32, 64>}, {pipeline_mode = #tpu.pipeline_mode<synchronous>, transform_indices = @transform_3, window_bounds = array<i64: 1, 64>}, {pipeline_mode = #tpu.pipeline_mode<synchronous>, transform_indices = @transform_4, window_bounds = array<i64: 32, 32>}, {pipeline_mode = #tpu.pipeline_mode<synchronous>, transform_indices = @transform_5, window_bounds = array<i64: 1, 32>}, {pipeline_mode = #tpu.pipeline_mode<synchronous>, transform_indices = @transform_6, window_bounds = array<i64: 32, 32>}, {pipeline_mode = #tpu.pipeline_mode<synchronous>, transform_indices = @transform_7, window_bounds = array<i64: 1, 32>}, {transform_indices = @transform_8, window_bounds = array<i64: 1, 8, 32>}]} {
    %c0_i32 = arith.constant 0 : i32
    %0 = arith.cmpi eq, %arg1, %c0_i32 : i32
    %1 = arith.extui %0 : i1 to i32
    %c0_i32_0 = arith.constant 0 : i32
    %2 = arith.cmpi ne, %1, %c0_i32_0 : i32
    scf.if %2 {
      %c0_83 = arith.constant 0 : index
      %c0_84 = arith.constant 0 : index
      %c0_85 = arith.constant 0 : index
      %104 = vector.load %arg3[%c0_83, %c0_84, %c0_85] : memref<1x8x32xf32, #tpu.memory_space<vmem>>, vector<1x8x32xf32>
      %105 = vector.shape_cast %104 : vector<1x8x32xf32> to vector<8x32xf32>
      %c0_86 = arith.constant 0 : index
      %c0_87 = arith.constant 0 : index
      %106 = vector.load %arg6[%c0_86, %c0_87] : memref<32x32xf32, #tpu.memory_space<vmem>>, vector<32x32xf32>
      %cst_88 = arith.constant dense<0.000000e+00> : vector<8x32xf32>
      %107 = tpu.matmul %105, %106, %cst_88 {dimension_numbers = #tpu.dot_dimension_numbers<[1], [0], [0], [1], [0, 0, 1, 1], [], []>} : vector<8x32xf32>, vector<32x32xf32>, vector<8x32xf32> -> vector<8x32xf32>
      %c0_89 = arith.constant 0 : index
      %c0_90 = arith.constant 0 : index
      %108 = vector.load %arg7[%c0_89, %c0_90] : memref<1x32xf32, #tpu.memory_space<vmem>>, vector<1x32xf32>
      %109 = vector.broadcast %108 : vector<1x32xf32> to vector<8x32xf32>
      %110 = arith.addf %107, %109 : vector<8x32xf32>
      %c0_91 = arith.constant 0 : index
      %c0_92 = arith.constant 0 : index
      %111 = vector.load %arg11[%c0_91, %c0_92] : memref<8x32xf32, #tpu.memory_space<vmem>>, vector<8x32xf32>
      tpu.vector_store %arg11[%c0_91, %c0_92], %110 {strides = array<i32>} : memref<8x32xf32, #tpu.memory_space<vmem>>, vector<8x32xf32>,
      %cst_93 = arith.constant 0.000000e+00 : f32
      %112 = vector.broadcast %cst_93 : f32 to vector<8x32xf32>
      %c0_94 = arith.constant 0 : index
      %c0_95 = arith.constant 0 : index
      %113 = vector.load %arg13[%c0_94, %c0_95] : memref<8x32xf32, #tpu.memory_space<vmem>>, vector<8x32xf32>
      tpu.vector_store %arg13[%c0_94, %c0_95], %112 {strides = array<i32>} : memref<8x32xf32, #tpu.memory_space<vmem>>, vector<8x32xf32>,
    } else {
    }
    %c0 = arith.constant 0 : index
    %c0_1 = arith.constant 0 : index
    %c0_2 = arith.constant 0 : index
    %3 = vector.load %arg2[%c0, %c0_1, %c0_2] : memref<1x8x32xf32, #tpu.memory_space<vmem>>, vector<1x8x32xf32>
    %4 = vector.shape_cast %3 : vector<1x8x32xf32> to vector<8x32xf32>
    %c0_3 = arith.constant 0 : index
    %c0_4 = arith.constant 0 : index
    %5 = vector.load %arg4[%c0_3, %c0_4] : memref<32x64xf32, #tpu.memory_space<vmem>>, vector<32x64xf32>
    %cst = arith.constant dense<0.000000e+00> : vector<8x64xf32>
    %6 = tpu.matmul %4, %5, %cst {dimension_numbers = #tpu.dot_dimension_numbers<[1], [0], [0], [1], [0, 0, 1, 1], [], []>} : vector<8x32xf32>, vector<32x64xf32>, vector<8x64xf32> -> vector<8x64xf32>
    %c0_5 = arith.constant 0 : index
    %c0_6 = arith.constant 0 : index
    %7 = vector.load %arg5[%c0_5, %c0_6] : memref<1x64xf32, #tpu.memory_space<vmem>>, vector<1x64xf32>
    %8 = vector.broadcast %7 : vector<1x64xf32> to vector<8x64xf32>
    %9 = arith.addf %6, %8 : vector<8x64xf32>
    %c0_7 = arith.constant 0 : index
    %c0_8 = arith.constant 0 : index
    %10 = vector.load %arg11[%c0_7, %c0_8] : memref<8x32xf32, #tpu.memory_space<vmem>>, vector<8x8xf32>
    %11 = vector.extract_strided_slice %9 {offsets = [0, 0], sizes = [8, 8], strides = [1, 1]} : vector<8x64xf32> to vector<8x8xf32>
    %cst_9 = arith.constant dense<0.000000e+00> : vector<8x8xf32>
    %12 = tpu.matmul %10, %11, %cst_9 {dimension_numbers = #tpu.dot_dimension_numbers<[1], [1], [0], [0], [0, 0, 1, 0], [], []>} : vector<8x8xf32>, vector<8x8xf32>, vector<8x8xf32> -> vector<8x8xf32>
    %c0_10 = arith.constant 0 : index
    %c0_11 = arith.constant 0 : index
    %c0_12 = arith.constant 0 : index
    %13 = vector.load %arg12[%c0_10, %c0_11, %c0_12] : memref<4x8x8xf32, #tpu.memory_space<vmem>>, vector<1x8x8xf32>
    %14 = vector.shape_cast %13 : vector<1x8x8xf32> to vector<8x8xf32>
    %15 = vector.shape_cast %12 : vector<8x8xf32> to vector<1x8x8xf32>
    tpu.vector_store %arg12[%c0_10, %c0_11, %c0_12], %15 {strides = array<i32>} : memref<4x8x8xf32, #tpu.memory_space<vmem>>, vector<1x8x8xf32>,
    %c0_13 = arith.constant 0 : index
    %c8 = arith.constant 8 : index
    %16 = vector.load %arg11[%c0_13, %c8] : memref<8x32xf32, #tpu.memory_space<vmem>>, vector<8x8xf32>
    %17 = vector.extract_strided_slice %9 {offsets = [0, 8], sizes = [8, 8], strides = [1, 1]} : vector<8x64xf32> to vector<8x8xf32>
    %cst_14 = arith.constant dense<0.000000e+00> : vector<8x8xf32>
    %18 = tpu.matmul %16, %17, %cst_14 {dimension_numbers = #tpu.dot_dimension_numbers<[1], [1], [0], [0], [0, 0, 1, 0], [], []>} : vector<8x8xf32>, vector<8x8xf32>, vector<8x8xf32> -> vector<8x8xf32>
    %c1 = arith.constant 1 : index
    %c0_15 = arith.constant 0 : index
    %c0_16 = arith.constant 0 : index
    %19 = vector.load %arg12[%c1, %c0_15, %c0_16] : memref<4x8x8xf32, #tpu.memory_space<vmem>>, vector<1x8x8xf32>
    %20 = vector.shape_cast %19 : vector<1x8x8xf32> to vector<8x8xf32>
    %21 = vector.shape_cast %18 : vector<8x8xf32> to vector<1x8x8xf32>
    tpu.vector_store %arg12[%c1, %c0_15, %c0_16], %21 {strides = array<i32>} : memref<4x8x8xf32, #tpu.memory_space<vmem>>, vector<1x8x8xf32>,
    %22 = arith.maximumf %12, %18 : vector<8x8xf32>
    %c0_17 = arith.constant 0 : index
    %c16 = arith.constant 16 : index
    %23 = vector.load %arg11[%c0_17, %c16] : memref<8x32xf32, #tpu.memory_space<vmem>>, vector<8x8xf32>
    %24 = vector.extract_strided_slice %9 {offsets = [0, 16], sizes = [8, 8], strides = [1, 1]} : vector<8x64xf32> to vector<8x8xf32>
    %cst_18 = arith.constant dense<0.000000e+00> : vector<8x8xf32>
    %25 = tpu.matmul %23, %24, %cst_18 {dimension_numbers = #tpu.dot_dimension_numbers<[1], [1], [0], [0], [0, 0, 1, 0], [], []>} : vector<8x8xf32>, vector<8x8xf32>, vector<8x8xf32> -> vector<8x8xf32>
    %c2 = arith.constant 2 : index
    %c0_19 = arith.constant 0 : index
    %c0_20 = arith.constant 0 : index
    %26 = vector.load %arg12[%c2, %c0_19, %c0_20] : memref<4x8x8xf32, #tpu.memory_space<vmem>>, vector<1x8x8xf32>
    %27 = vector.shape_cast %26 : vector<1x8x8xf32> to vector<8x8xf32>
    %28 = vector.shape_cast %25 : vector<8x8xf32> to vector<1x8x8xf32>
    tpu.vector_store %arg12[%c2, %c0_19, %c0_20], %28 {strides = array<i32>} : memref<4x8x8xf32, #tpu.memory_space<vmem>>, vector<1x8x8xf32>,
    %29 = arith.maximumf %22, %25 : vector<8x8xf32>
    %c0_21 = arith.constant 0 : index
    %c24 = arith.constant 24 : index
    %30 = vector.load %arg11[%c0_21, %c24] : memref<8x32xf32, #tpu.memory_space<vmem>>, vector<8x8xf32>
    %31 = vector.extract_strided_slice %9 {offsets = [0, 24], sizes = [8, 8], strides = [1, 1]} : vector<8x64xf32> to vector<8x8xf32>
    %cst_22 = arith.constant dense<0.000000e+00> : vector<8x8xf32>
    %32 = tpu.matmul %30, %31, %cst_22 {dimension_numbers = #tpu.dot_dimension_numbers<[1], [1], [0], [0], [0, 0, 1, 0], [], []>} : vector<8x8xf32>, vector<8x8xf32>, vector<8x8xf32> -> vector<8x8xf32>
    %c3 = arith.constant 3 : index
    %c0_23 = arith.constant 0 : index
    %c0_24 = arith.constant 0 : index
    %33 = vector.load %arg12[%c3, %c0_23, %c0_24] : memref<4x8x8xf32, #tpu.memory_space<vmem>>, vector<1x8x8xf32>
    %34 = vector.shape_cast %33 : vector<1x8x8xf32> to vector<8x8xf32>
    %35 = vector.shape_cast %32 : vector<8x8xf32> to vector<1x8x8xf32>
    tpu.vector_store %arg12[%c3, %c0_23, %c0_24], %35 {strides = array<i32>} : memref<4x8x8xf32, #tpu.memory_space<vmem>>, vector<1x8x8xf32>,
    %36 = arith.maximumf %29, %32 : vector<8x8xf32>
    %c0_25 = arith.constant 0 : index
    %c0_26 = arith.constant 0 : index
    %c0_27 = arith.constant 0 : index
    %37 = vector.load %arg12[%c0_25, %c0_26, %c0_27] : memref<4x8x8xf32, #tpu.memory_space<vmem>>, vector<1x8x8xf32>
    %38 = vector.shape_cast %37 : vector<1x8x8xf32> to vector<8x8xf32>
    %39 = arith.subf %38, %36 : vector<8x8xf32>
    %40 = math.exp %39 : vector<8x8xf32>
    %c0_28 = arith.constant 0 : index
    %c0_29 = arith.constant 0 : index
    %c0_30 = arith.constant 0 : index
    %41 = vector.load %arg12[%c0_28, %c0_29, %c0_30] : memref<4x8x8xf32, #tpu.memory_space<vmem>>, vector<1x8x8xf32>
    %42 = vector.shape_cast %41 : vector<1x8x8xf32> to vector<8x8xf32>
    %43 = vector.shape_cast %40 : vector<8x8xf32> to vector<1x8x8xf32>
    tpu.vector_store %arg12[%c0_28, %c0_29, %c0_30], %43 {strides = array<i32>} : memref<4x8x8xf32, #tpu.memory_space<vmem>>, vector<1x8x8xf32>,
    %c1_31 = arith.constant 1 : index
    %c0_32 = arith.constant 0 : index
    %c0_33 = arith.constant 0 : index
    %44 = vector.load %arg12[%c1_31, %c0_32, %c0_33] : memref<4x8x8xf32, #tpu.memory_space<vmem>>, vector<1x8x8xf32>
    %45 = vector.shape_cast %44 : vector<1x8x8xf32> to vector<8x8xf32>
    %46 = arith.subf %45, %36 : vector<8x8xf32>
    %47 = math.exp %46 : vector<8x8xf32>
    %c1_34 = arith.constant 1 : index
    %c0_35 = arith.constant 0 : index
    %c0_36 = arith.constant 0 : index
    %48 = vector.load %arg12[%c1_34, %c0_35, %c0_36] : memref<4x8x8xf32, #tpu.memory_space<vmem>>, vector<1x8x8xf32>
    %49 = vector.shape_cast %48 : vector<1x8x8xf32> to vector<8x8xf32>
    %50 = vector.shape_cast %47 : vector<8x8xf32> to vector<1x8x8xf32>
    tpu.vector_store %arg12[%c1_34, %c0_35, %c0_36], %50 {strides = array<i32>} : memref<4x8x8xf32, #tpu.memory_space<vmem>>, vector<1x8x8xf32>,
    %51 = arith.addf %40, %47 : vector<8x8xf32>
    %c2_37 = arith.constant 2 : index
    %c0_38 = arith.constant 0 : index
    %c0_39 = arith.constant 0 : index
    %52 = vector.load %arg12[%c2_37, %c0_38, %c0_39] : memref<4x8x8xf32, #tpu.memory_space<vmem>>, vector<1x8x8xf32>
    %53 = vector.shape_cast %52 : vector<1x8x8xf32> to vector<8x8xf32>
    %54 = arith.subf %53, %36 : vector<8x8xf32>
    %55 = math.exp %54 : vector<8x8xf32>
    %c2_40 = arith.constant 2 : index
    %c0_41 = arith.constant 0 : index
    %c0_42 = arith.constant 0 : index
    %56 = vector.load %arg12[%c2_40, %c0_41, %c0_42] : memref<4x8x8xf32, #tpu.memory_space<vmem>>, vector<1x8x8xf32>
    %57 = vector.shape_cast %56 : vector<1x8x8xf32> to vector<8x8xf32>
    %58 = vector.shape_cast %55 : vector<8x8xf32> to vector<1x8x8xf32>
    tpu.vector_store %arg12[%c2_40, %c0_41, %c0_42], %58 {strides = array<i32>} : memref<4x8x8xf32, #tpu.memory_space<vmem>>, vector<1x8x8xf32>,
    %59 = arith.addf %51, %55 : vector<8x8xf32>
    %c3_43 = arith.constant 3 : index
    %c0_44 = arith.constant 0 : index
    %c0_45 = arith.constant 0 : index
    %60 = vector.load %arg12[%c3_43, %c0_44, %c0_45] : memref<4x8x8xf32, #tpu.memory_space<vmem>>, vector<1x8x8xf32>
    %61 = vector.shape_cast %60 : vector<1x8x8xf32> to vector<8x8xf32>
    %62 = arith.subf %61, %36 : vector<8x8xf32>
    %63 = math.exp %62 : vector<8x8xf32>
    %c3_46 = arith.constant 3 : index
    %c0_47 = arith.constant 0 : index
    %c0_48 = arith.constant 0 : index
    %64 = vector.load %arg12[%c3_46, %c0_47, %c0_48] : memref<4x8x8xf32, #tpu.memory_space<vmem>>, vector<1x8x8xf32>
    %65 = vector.shape_cast %64 : vector<1x8x8xf32> to vector<8x8xf32>
    %66 = vector.shape_cast %63 : vector<8x8xf32> to vector<1x8x8xf32>
    tpu.vector_store %arg12[%c3_46, %c0_47, %c0_48], %66 {strides = array<i32>} : memref<4x8x8xf32, #tpu.memory_space<vmem>>, vector<1x8x8xf32>,
    %67 = arith.addf %59, %63 : vector<8x8xf32>
    %68 = tpu.reciprocal %67 : vector<8x8xf32> -> vector<8x8xf32>
    %69 = vector.extract_strided_slice %9 {offsets = [0, 32], sizes = [8, 8], strides = [1, 1]} : vector<8x64xf32> to vector<8x8xf32>
    %c0_49 = arith.constant 0 : index
    %c0_50 = arith.constant 0 : index
    %c0_51 = arith.constant 0 : index
    %70 = vector.load %arg12[%c0_49, %c0_50, %c0_51] : memref<4x8x8xf32, #tpu.memory_space<vmem>>, vector<1x8x8xf32>
    %71 = vector.shape_cast %70 : vector<1x8x8xf32> to vector<8x8xf32>
    %72 = arith.mulf %71, %68 : vector<8x8xf32>
    %c0_52 = arith.constant 0 : index
    %c0_53 = arith.constant 0 : index
    %73 = vector.load %arg13[%c0_52, %c0_53] : memref<8x32xf32, #tpu.memory_space<vmem>>, vector<8x8xf32>
    %cst_54 = arith.constant dense<0.000000e+00> : vector<8x8xf32>
    %74 = tpu.matmul %72, %69, %cst_54 {dimension_numbers = #tpu.dot_dimension_numbers<[1], [0], [0], [1], [0, 0, 1, 1], [], []>} : vector<8x8xf32>, vector<8x8xf32>, vector<8x8xf32> -> vector<8x8xf32>
    %75 = arith.addf %73, %74 : vector<8x8xf32>
    %c0_55 = arith.constant 0 : index
    %c0_56 = arith.constant 0 : index
    %76 = vector.load %arg13[%c0_55, %c0_56] : memref<8x32xf32, #tpu.memory_space<vmem>>, vector<8x8xf32>
    tpu.vector_store %arg13[%c0_55, %c0_56], %75 {strides = array<i32>} : memref<8x32xf32, #tpu.memory_space<vmem>>, vector<8x8xf32>,
    %77 = vector.extract_strided_slice %9 {offsets = [0, 40], sizes = [8, 8], strides = [1, 1]} : vector<8x64xf32> to vector<8x8xf32>
    %c1_57 = arith.constant 1 : index
    %c0_58 = arith.constant 0 : index
    %c0_59 = arith.constant 0 : index
    %78 = vector.load %arg12[%c1_57, %c0_58, %c0_59] : memref<4x8x8xf32, #tpu.memory_space<vmem>>, vector<1x8x8xf32>
    %79 = vector.shape_cast %78 : vector<1x8x8xf32> to vector<8x8xf32>
    %80 = arith.mulf %79, %68 : vector<8x8xf32>
    %c0_60 = arith.constant 0 : index
    %c8_61 = arith.constant 8 : index
    %81 = vector.load %arg13[%c0_60, %c8_61] : memref<8x32xf32, #tpu.memory_space<vmem>>, vector<8x8xf32>
    %cst_62 = arith.constant dense<0.000000e+00> : vector<8x8xf32>
    %82 = tpu.matmul %80, %77, %cst_62 {dimension_numbers = #tpu.dot_dimension_numbers<[1], [0], [0], [1], [0, 0, 1, 1], [], []>} : vector<8x8xf32>, vector<8x8xf32>, vector<8x8xf32> -> vector<8x8xf32>
    %83 = arith.addf %81, %82 : vector<8x8xf32>
    %c0_63 = arith.constant 0 : index
    %c8_64 = arith.constant 8 : index
    %84 = vector.load %arg13[%c0_63, %c8_64] : memref<8x32xf32, #tpu.memory_space<vmem>>, vector<8x8xf32>
    tpu.vector_store %arg13[%c0_63, %c8_64], %83 {strides = array<i32>} : memref<8x32xf32, #tpu.memory_space<vmem>>, vector<8x8xf32>,
    %85 = vector.extract_strided_slice %9 {offsets = [0, 48], sizes = [8, 8], strides = [1, 1]} : vector<8x64xf32> to vector<8x8xf32>
    %c2_65 = arith.constant 2 : index
    %c0_66 = arith.constant 0 : index
    %c0_67 = arith.constant 0 : index
    %86 = vector.load %arg12[%c2_65, %c0_66, %c0_67] : memref<4x8x8xf32, #tpu.memory_space<vmem>>, vector<1x8x8xf32>
    %87 = vector.shape_cast %86 : vector<1x8x8xf32> to vector<8x8xf32>
    %88 = arith.mulf %87, %68 : vector<8x8xf32>
    %c0_68 = arith.constant 0 : index
    %c16_69 = arith.constant 16 : index
    %89 = vector.load %arg13[%c0_68, %c16_69] : memref<8x32xf32, #tpu.memory_space<vmem>>, vector<8x8xf32>
    %cst_70 = arith.constant dense<0.000000e+00> : vector<8x8xf32>
    %90 = tpu.matmul %88, %85, %cst_70 {dimension_numbers = #tpu.dot_dimension_numbers<[1], [0], [0], [1], [0, 0, 1, 1], [], []>} : vector<8x8xf32>, vector<8x8xf32>, vector<8x8xf32> -> vector<8x8xf32>
    %91 = arith.addf %89, %90 : vector<8x8xf32>
    %c0_71 = arith.constant 0 : index
    %c16_72 = arith.constant 16 : index
    %92 = vector.load %arg13[%c0_71, %c16_72] : memref<8x32xf32, #tpu.memory_space<vmem>>, vector<8x8xf32>
    tpu.vector_store %arg13[%c0_71, %c16_72], %91 {strides = array<i32>} : memref<8x32xf32, #tpu.memory_space<vmem>>, vector<8x8xf32>,
    %93 = vector.extract_strided_slice %9 {offsets = [0, 56], sizes = [8, 8], strides = [1, 1]} : vector<8x64xf32> to vector<8x8xf32>
    %c3_73 = arith.constant 3 : index
    %c0_74 = arith.constant 0 : index
    %c0_75 = arith.constant 0 : index
    %94 = vector.load %arg12[%c3_73, %c0_74, %c0_75] : memref<4x8x8xf32, #tpu.memory_space<vmem>>, vector<1x8x8xf32>
    %95 = vector.shape_cast %94 : vector<1x8x8xf32> to vector<8x8xf32>
    %96 = arith.mulf %95, %68 : vector<8x8xf32>
    %c0_76 = arith.constant 0 : index
    %c24_77 = arith.constant 24 : index
    %97 = vector.load %arg13[%c0_76, %c24_77] : memref<8x32xf32, #tpu.memory_space<vmem>>, vector<8x8xf32>
    %cst_78 = arith.constant dense<0.000000e+00> : vector<8x8xf32>
    %98 = tpu.matmul %96, %93, %cst_78 {dimension_numbers = #tpu.dot_dimension_numbers<[1], [0], [0], [1], [0, 0, 1, 1], [], []>} : vector<8x8xf32>, vector<8x8xf32>, vector<8x8xf32> -> vector<8x8xf32>
    %99 = arith.addf %97, %98 : vector<8x8xf32>
    %c0_79 = arith.constant 0 : index
    %c24_80 = arith.constant 24 : index
    %100 = vector.load %arg13[%c0_79, %c24_80] : memref<8x32xf32, #tpu.memory_space<vmem>>, vector<8x8xf32>
    tpu.vector_store %arg13[%c0_79, %c24_80], %99 {strides = array<i32>} : memref<8x32xf32, #tpu.memory_space<vmem>>, vector<8x8xf32>,
    %c0_i32_81 = arith.constant 0 : i32
    %101 = arith.cmpi eq, %arg1, %c0_i32_81 : i32
    %102 = arith.extui %101 : i1 to i32
    %c0_i32_82 = arith.constant 0 : i32
    %103 = arith.cmpi ne, %102, %c0_i32_82 : i32
    scf.if %103 {
      %c0_83 = arith.constant 0 : index
      %c0_84 = arith.constant 0 : index
      %104 = vector.load %arg13[%c0_83, %c0_84] : memref<8x32xf32, #tpu.memory_space<vmem>>, vector<8x32xf32>
      %105 = vector.shape_cast %104 : vector<8x32xf32> to vector<2x4x32xf32>
      %106 = vector.extract_strided_slice %105 {offsets = [0, 0, 0], sizes = [2, 1, 8], strides = [1, 1, 1]} : vector<2x4x32xf32> to vector<2x1x8xf32>
      %107 = vector.shape_cast %106 : vector<2x1x8xf32> to vector<2x8xf32>
      %c0_85 = arith.constant 0 : index
      %c0_86 = arith.constant 0 : index
      %108 = vector.load %arg14[%c0_85, %c0_86] : memref<8x32xf32, #tpu.memory_space<vmem>>, vector<2x8xf32>
      tpu.vector_store %arg14[%c0_85, %c0_86], %107 {strides = array<i32>} : memref<8x32xf32, #tpu.memory_space<vmem>>, vector<2x8xf32>,
      %109 = vector.extract_strided_slice %105 {offsets = [0, 1, 0], sizes = [2, 1, 8], strides = [1, 1, 1]} : vector<2x4x32xf32> to vector<2x1x8xf32>
      %110 = vector.shape_cast %109 : vector<2x1x8xf32> to vector<2x8xf32>
      %c0_87 = arith.constant 0 : index
      %c8_88 = arith.constant 8 : index
      %111 = vector.load %arg14[%c0_87, %c8_88] : memref<8x32xf32, #tpu.memory_space<vmem>>, vector<2x8xf32>
      tpu.vector_store %arg14[%c0_87, %c8_88], %110 {strides = array<i32>} : memref<8x32xf32, #tpu.memory_space<vmem>>, vector<2x8xf32>,
      %112 = vector.extract_strided_slice %105 {offsets = [0, 2, 0], sizes = [2, 1, 8], strides = [1, 1, 1]} : vector<2x4x32xf32> to vector<2x1x8xf32>
      %113 = vector.shape_cast %112 : vector<2x1x8xf32> to vector<2x8xf32>
      %c0_89 = arith.constant 0 : index
      %c16_90 = arith.constant 16 : index
      %114 = vector.load %arg14[%c0_89, %c16_90] : memref<8x32xf32, #tpu.memory_space<vmem>>, vector<2x8xf32>
      tpu.vector_store %arg14[%c0_89, %c16_90], %113 {strides = array<i32>} : memref<8x32xf32, #tpu.memory_space<vmem>>, vector<2x8xf32>,
      %115 = vector.extract_strided_slice %105 {offsets = [0, 3, 0], sizes = [2, 1, 8], strides = [1, 1, 1]} : vector<2x4x32xf32> to vector<2x1x8xf32>
      %116 = vector.shape_cast %115 : vector<2x1x8xf32> to vector<2x8xf32>
      %c0_91 = arith.constant 0 : index
      %c24_92 = arith.constant 24 : index
      %117 = vector.load %arg14[%c0_91, %c24_92] : memref<8x32xf32, #tpu.memory_space<vmem>>, vector<2x8xf32>
      tpu.vector_store %arg14[%c0_91, %c24_92], %116 {strides = array<i32>} : memref<8x32xf32, #tpu.memory_space<vmem>>, vector<2x8xf32>,
      %118 = vector.extract_strided_slice %105 {offsets = [0, 0, 8], sizes = [2, 1, 8], strides = [1, 1, 1]} : vector<2x4x32xf32> to vector<2x1x8xf32>
      %119 = vector.shape_cast %118 : vector<2x1x8xf32> to vector<2x8xf32>
      %c2_93 = arith.constant 2 : index
      %c0_94 = arith.constant 0 : index
      %120 = vector.load %arg14[%c2_93, %c0_94] : memref<8x32xf32, #tpu.memory_space<vmem>>, vector<2x8xf32>
      tpu.vector_store %arg14[%c2_93, %c0_94], %119 {strides = array<i32>} : memref<8x32xf32, #tpu.memory_space<vmem>>, vector<2x8xf32>,
      %121 = vector.extract_strided_slice %105 {offsets = [0, 1, 8], sizes = [2, 1, 8], strides = [1, 1, 1]} : vector<2x4x32xf32> to vector<2x1x8xf32>
      %122 = vector.shape_cast %121 : vector<2x1x8xf32> to vector<2x8xf32>
      %c2_95 = arith.constant 2 : index
      %c8_96 = arith.constant 8 : index
      %123 = vector.load %arg14[%c2_95, %c8_96] : memref<8x32xf32, #tpu.memory_space<vmem>>, vector<2x8xf32>
      tpu.vector_store %arg14[%c2_95, %c8_96], %122 {strides = array<i32>} : memref<8x32xf32, #tpu.memory_space<vmem>>, vector<2x8xf32>,
      %124 = vector.extract_strided_slice %105 {offsets = [0, 2, 8], sizes = [2, 1, 8], strides = [1, 1, 1]} : vector<2x4x32xf32> to vector<2x1x8xf32>
      %125 = vector.shape_cast %124 : vector<2x1x8xf32> to vector<2x8xf32>
      %c2_97 = arith.constant 2 : index
      %c16_98 = arith.constant 16 : index
      %126 = vector.load %arg14[%c2_97, %c16_98] : memref<8x32xf32, #tpu.memory_space<vmem>>, vector<2x8xf32>
      tpu.vector_store %arg14[%c2_97, %c16_98], %125 {strides = array<i32>} : memref<8x32xf32, #tpu.memory_space<vmem>>, vector<2x8xf32>,
      %127 = vector.extract_strided_slice %105 {offsets = [0, 3, 8], sizes = [2, 1, 8], strides = [1, 1, 1]} : vector<2x4x32xf32> to vector<2x1x8xf32>
      %128 = vector.shape_cast %127 : vector<2x1x8xf32> to vector<2x8xf32>
      %c2_99 = arith.constant 2 : index
      %c24_100 = arith.constant 24 : index
      %129 = vector.load %arg14[%c2_99, %c24_100] : memref<8x32xf32, #tpu.memory_space<vmem>>, vector<2x8xf32>
      tpu.vector_store %arg14[%c2_99, %c24_100], %128 {strides = array<i32>} : memref<8x32xf32, #tpu.memory_space<vmem>>, vector<2x8xf32>,
      %130 = vector.extract_strided_slice %105 {offsets = [0, 0, 16], sizes = [2, 1, 8], strides = [1, 1, 1]} : vector<2x4x32xf32> to vector<2x1x8xf32>
      %131 = vector.shape_cast %130 : vector<2x1x8xf32> to vector<2x8xf32>
      %c4 = arith.constant 4 : index
      %c0_101 = arith.constant 0 : index
      %132 = vector.load %arg14[%c4, %c0_101] : memref<8x32xf32, #tpu.memory_space<vmem>>, vector<2x8xf32>
      tpu.vector_store %arg14[%c4, %c0_101], %131 {strides = array<i32>} : memref<8x32xf32, #tpu.memory_space<vmem>>, vector<2x8xf32>,
      %133 = vector.extract_strided_slice %105 {offsets = [0, 1, 16], sizes = [2, 1, 8], strides = [1, 1, 1]} : vector<2x4x32xf32> to vector<2x1x8xf32>
      %134 = vector.shape_cast %133 : vector<2x1x8xf32> to vector<2x8xf32>
      %c4_102 = arith.constant 4 : index
      %c8_103 = arith.constant 8 : index
      %135 = vector.load %arg14[%c4_102, %c8_103] : memref<8x32xf32, #tpu.memory_space<vmem>>, vector<2x8xf32>
      tpu.vector_store %arg14[%c4_102, %c8_103], %134 {strides = array<i32>} : memref<8x32xf32, #tpu.memory_space<vmem>>, vector<2x8xf32>,
      %136 = vector.extract_strided_slice %105 {offsets = [0, 2, 16], sizes = [2, 1, 8], strides = [1, 1, 1]} : vector<2x4x32xf32> to vector<2x1x8xf32>
      %137 = vector.shape_cast %136 : vector<2x1x8xf32> to vector<2x8xf32>
      %c4_104 = arith.constant 4 : index
      %c16_105 = arith.constant 16 : index
      %138 = vector.load %arg14[%c4_104, %c16_105] : memref<8x32xf32, #tpu.memory_space<vmem>>, vector<2x8xf32>
      tpu.vector_store %arg14[%c4_104, %c16_105], %137 {strides = array<i32>} : memref<8x32xf32, #tpu.memory_space<vmem>>, vector<2x8xf32>,
      %139 = vector.extract_strided_slice %105 {offsets = [0, 3, 16], sizes = [2, 1, 8], strides = [1, 1, 1]} : vector<2x4x32xf32> to vector<2x1x8xf32>
      %140 = vector.shape_cast %139 : vector<2x1x8xf32> to vector<2x8xf32>
      %c4_106 = arith.constant 4 : index
      %c24_107 = arith.constant 24 : index
      %141 = vector.load %arg14[%c4_106, %c24_107] : memref<8x32xf32, #tpu.memory_space<vmem>>, vector<2x8xf32>
      tpu.vector_store %arg14[%c4_106, %c24_107], %140 {strides = array<i32>} : memref<8x32xf32, #tpu.memory_space<vmem>>, vector<2x8xf32>,
      %142 = vector.extract_strided_slice %105 {offsets = [0, 0, 24], sizes = [2, 1, 8], strides = [1, 1, 1]} : vector<2x4x32xf32> to vector<2x1x8xf32>
      %143 = vector.shape_cast %142 : vector<2x1x8xf32> to vector<2x8xf32>
      %c6 = arith.constant 6 : index
      %c0_108 = arith.constant 0 : index
      %144 = vector.load %arg14[%c6, %c0_108] : memref<8x32xf32, #tpu.memory_space<vmem>>, vector<2x8xf32>
      tpu.vector_store %arg14[%c6, %c0_108], %143 {strides = array<i32>} : memref<8x32xf32, #tpu.memory_space<vmem>>, vector<2x8xf32>,
      %145 = vector.extract_strided_slice %105 {offsets = [0, 1, 24], sizes = [2, 1, 8], strides = [1, 1, 1]} : vector<2x4x32xf32> to vector<2x1x8xf32>
      %146 = vector.shape_cast %145 : vector<2x1x8xf32> to vector<2x8xf32>
      %c6_109 = arith.constant 6 : index
      %c8_110 = arith.constant 8 : index
      %147 = vector.load %arg14[%c6_109, %c8_110] : memref<8x32xf32, #tpu.memory_space<vmem>>, vector<2x8xf32>
      tpu.vector_store %arg14[%c6_109, %c8_110], %146 {strides = array<i32>} : memref<8x32xf32, #tpu.memory_space<vmem>>, vector<2x8xf32>,
      %148 = vector.extract_strided_slice %105 {offsets = [0, 2, 24], sizes = [2, 1, 8], strides = [1, 1, 1]} : vector<2x4x32xf32> to vector<2x1x8xf32>
      %149 = vector.shape_cast %148 : vector<2x1x8xf32> to vector<2x8xf32>
      %c6_111 = arith.constant 6 : index
      %c16_112 = arith.constant 16 : index
      %150 = vector.load %arg14[%c6_111, %c16_112] : memref<8x32xf32, #tpu.memory_space<vmem>>, vector<2x8xf32>
      tpu.vector_store %arg14[%c6_111, %c16_112], %149 {strides = array<i32>} : memref<8x32xf32, #tpu.memory_space<vmem>>, vector<2x8xf32>,
      %151 = vector.extract_strided_slice %105 {offsets = [0, 3, 24], sizes = [2, 1, 8], strides = [1, 1, 1]} : vector<2x4x32xf32> to vector<2x1x8xf32>
      %152 = vector.shape_cast %151 : vector<2x1x8xf32> to vector<2x8xf32>
      %c6_113 = arith.constant 6 : index
      %c24_114 = arith.constant 24 : index
      %153 = vector.load %arg14[%c6_113, %c24_114] : memref<8x32xf32, #tpu.memory_space<vmem>>, vector<2x8xf32>
      tpu.vector_store %arg14[%c6_113, %c24_114], %152 {strides = array<i32>} : memref<8x32xf32, #tpu.memory_space<vmem>>, vector<2x8xf32>,
      %c0_115 = arith.constant 0 : index
      %c0_116 = arith.constant 0 : index
      %154 = vector.load %arg14[%c0_115, %c0_116] : memref<8x32xf32, #tpu.memory_space<vmem>>, vector<8x32xf32>
      %c0_117 = arith.constant 0 : index
      %c0_118 = arith.constant 0 : index
      %155 = vector.load %arg8[%c0_117, %c0_118] : memref<32x32xf32, #tpu.memory_space<vmem>>, vector<32x32xf32>
      %cst_119 = arith.constant dense<0.000000e+00> : vector<8x32xf32>
      %156 = tpu.matmul %154, %155, %cst_119 {dimension_numbers = #tpu.dot_dimension_numbers<[1], [0], [0], [1], [0, 0, 1, 1], [], []>} : vector<8x32xf32>, vector<32x32xf32>, vector<8x32xf32> -> vector<8x32xf32>
      %c0_120 = arith.constant 0 : index
      %c0_121 = arith.constant 0 : index
      %157 = vector.load %arg9[%c0_120, %c0_121] : memref<1x32xf32, #tpu.memory_space<vmem>>, vector<1x32xf32>
      %158 = vector.broadcast %157 : vector<1x32xf32> to vector<8x32xf32>
      %159 = arith.addf %156, %158 : vector<8x32xf32>
      %c0_122 = arith.constant 0 : index
      %c0_123 = arith.constant 0 : index
      %c0_124 = arith.constant 0 : index
      %160 = vector.load %arg10[%c0_122, %c0_123, %c0_124] : memref<1x8x32xf32, #tpu.memory_space<vmem>>, vector<1x8x32xf32>
      %161 = vector.shape_cast %160 : vector<1x8x32xf32> to vector<8x32xf32>
      %162 = vector.shape_cast %159 : vector<8x32xf32> to vector<1x8x32xf32>
      tpu.vector_store %arg10[%c0_122, %c0_123, %c0_124], %162 {strides = array<i32>} : memref<1x8x32xf32, #tpu.memory_space<vmem>>, vector<1x8x32xf32>,
    } else {
    }
    return
  }
  func.func @transform_0(%arg0: i32, %arg1: i32) -> (i32, i32, i32) {
    %c0_i32 = arith.constant 0 : i32
    %c0_i32_0 = arith.constant 0 : i32
    return %arg0, %arg1, %c0_i32 : i32, i32, i32
  }
  func.func @transform_1(%arg0: i32, %arg1: i32) -> (i32, i32, i32) {
    %c0_i32 = arith.constant 0 : i32
    %c0_i32_0 = arith.constant 0 : i32
    %c0_i32_1 = arith.constant 0 : i32
    return %arg0, %c0_i32, %c0_i32_0 : i32, i32, i32
  }
  func.func @transform_2(%arg0: i32, %arg1: i32) -> (i32, i32) {
    %c0_i32 = arith.constant 0 : i32
    %c0_i32_0 = arith.constant 0 : i32
    %c0_i32_1 = arith.constant 0 : i32
    return %c0_i32, %c0_i32_0 : i32, i32
  }
  func.func @transform_3(%arg0: i32, %arg1: i32) -> (i32, i32) {
    %c0_i32 = arith.constant 0 : i32
    %c0_i32_0 = arith.constant 0 : i32
    %c0_i32_1 = arith.constant 0 : i32
    return %c0_i32, %c0_i32_0 : i32, i32
  }
  func.func @transform_4(%arg0: i32, %arg1: i32) -> (i32, i32) {
    %c0_i32 = arith.constant 0 : i32
    %c0_i32_0 = arith.constant 0 : i32
    %c0_i32_1 = arith.constant 0 : i32
    return %c0_i32, %c0_i32_0 : i32, i32
  }
  func.func @transform_5(%arg0: i32, %arg1: i32) -> (i32, i32) {
    %c0_i32 = arith.constant 0 : i32
    %c0_i32_0 = arith.constant 0 : i32
    %c0_i32_1 = arith.constant 0 : i32
    return %c0_i32, %c0_i32_0 : i32, i32
  }
  func.func @transform_6(%arg0: i32, %arg1: i32) -> (i32, i32) {
    %c0_i32 = arith.constant 0 : i32
    %c0_i32_0 = arith.constant 0 : i32
    %c0_i32_1 = arith.constant 0 : i32
    return %c0_i32, %c0_i32_0 : i32, i32
  }
  func.func @transform_7(%arg0: i32, %arg1: i32) -> (i32, i32) {
    %c0_i32 = arith.constant 0 : i32
    %c0_i32_0 = arith.constant 0 : i32
    %c0_i32_1 = arith.constant 0 : i32
    return %c0_i32, %c0_i32_0 : i32, i32
  }
  func.func @transform_8(%arg0: i32, %arg1: i32) -> (i32, i32, i32) {
    %c0_i32 = arith.constant 0 : i32
    %c0_i32_0 = arith.constant 0 : i32
    %c0_i32_1 = arith.constant 0 : i32
    return %arg0, %c0_i32, %c0_i32_0 : i32, i32, i32
  }
}

</mosaic_0001>

<bundles_post_ra>
// kernel: tpu_custom_call.1
= control target key start
LH: loop header
LB: loop body
LE: loop exit
PB: predicated region body
PF: predicated region fallthrough
CT: control target
= control target key end

     0   :  { %s1781_s0 = inlined_call_operand.hbm [shape: f32[2,8,32], index: 0, kind: input, shape index: {}]   ;;  %s1782_s1 = inlined_call_operand.hbm [shape: f32[2,8,32], index: 1, kind: input, shape index: {}]   ;;  %s1783_s2 = inlined_call_operand.hbm [shape: f32[32,64], index: 2, kind: input, shape index: {}]   ;;  %s1784_s3 = inlined_call_operand.vmem [shape: f32[1,64], index: 3, kind: input, shape index: {}]   ;;  %s1785_s4 = inlined_call_operand.hbm [shape: f32[32,32], index: 4, kind: input, shape index: {}]   ;;  %s1786_s5 = inlined_call_operand.vmem [shape: f32[1,32], index: 5, kind: input, shape index: {}]   ;;  %s1787_s6 = inlined_call_operand.hbm [shape: f32[32,32], index: 6, kind: input, shape index: {}]   ;;  %s1788_s7 = inlined_call_operand.vmem [shape: f32[1,32], index: 7, kind: input, shape index: {}]   ;;  %s1789_s8 = inlined_call_operand.hbm [shape: f32[2,8,32], index: 8, kind: output, shape index: {}]  }
   0x1   :  { %1795 = sst [smem:[#allocation27_spill]] %s1783_s2 }
   0x2   :  { %1796 = sst [smem:[#allocation28_spill]] %s1785_s4 }
   0x3   :  { %1797 = sst [smem:[#allocation29_spill]] %s1787_s6 }
   0x4   :  { %13 = vsyncpa [#allocation7], 0 }
   0x5   :  { %15 = vsyncpa [#allocation7 + $0x1], 0 }
   0x6   :  { %16 = vsyncpa [#allocation10], 0 }
   0x7   :  { %18 = vsyncpa [#allocation10 + $0x1], 0 }
   0x8   :  { %19 = vsyncpa [#allocation13], 0 }
   0x9   :  { %20 = vsyncpa [#allocation8], 0 }
   0xa   :  { %22 = vsyncpa [#allocation8 + $0x1], 0  ;;  %s1531_s27 = smov 0   ;;  %s1533_s28 = smov 0  }
   0xb   :  { %s1535_s29 = smov 0   ;;  %s1537_s30 = smov 0  }
   0xc   :  { %s1539_s9 = smov 0   ;;  %s1541_s10 = smov 0  }
   0xd LB: > { %1798 = sst [smem:[#allocation21_spill]] %s1448_s27  ;;  %s1562_s11 = sadd.s32 4294967295, %s1468_s10   ;;  %s1468_s10 = sphi %s1541_s10, %s28_s10   ;;  %s1464_s9 = sphi %s1539_s9, %s1818_s9   ;;  %s1460_s30 = sphi %s1537_s30, %s1817_s30   ;;  %s1456_s29 = sphi %s1535_s29, %s1816_s29   ;;  %s1452_s28 = sphi %s1533_s28, %s1820_s28   ;;  %s1448_s27 = sphi %s1531_s27, %s1819_s27  }
   0xe   : > { %1799 = sst [smem:[#allocation22_spill]] %s1456_s29  ;;  %p1065_p0 = scmp.ge.s32.totalorder %s1468_s10, 1 }
   0xf   : > { %1800 = sst [smem:[#allocation23_spill]] %s1464_s9  ;;  %p63_p1 = scmp.eq.s32.totalorder %s1562_s11, 0 }
  0x10   : > { %p251_p2 = scmp.lt.s32.totalorder %s1468_s10, 3  ;;  %s1801_s2 = sld [smem:[#allocation27_spill]] }
  0x11   : > { %s1470_s16 = smov [#allocation11]   ;;  %p1069_p6 = scmp.ge.s32.totalorder %s1468_s10, 2 }
  0x12   : > { %p1570_p3 = pnand %p1065_p0, %p251_p2  ;;  %s264_s17 = sshll.u32 %s1470_s16, 4  ;;  %s265_s17 = int_to_ptr.vmem [resolvable:$true] %s264_s17 }
  0x13   : > { %s1804_s4 = sld [smem:[#allocation28_spill]]  ;;  %s1471_s22 = smov 128  }
  0x14   : > { %p1118_p4 = pneg %p1570_p3  ;;  %s1472_s23 = smov 8  }
  0x15   : > { %s1473_s24 = smov [#allocation12]   ;;  %s1805_s6 = sld [smem:[#allocation29_spill]] }
  0x16   : > { %s262_s14 = sshll.u32 %s1801_s2, 4  ;;  %p1578_p5 = pnand %p1118_p4, %p63_p1  ;;  %s263_s14 = int_to_ptr.hbm [resolvable:$true] %s262_s14 }
  0x17   : > { %s281_s25 = sshll.u32 %s1473_s24, 4  ;;  %s1474_s16 = smov [#allocation14]   ;;  %s282_s25 = int_to_ptr.vmem [resolvable:$true] %s281_s25 }
  0x18   : > { %1121 = dma.hbm_to_vmem [thread:$0]  (!%p1578_p5), %s263_s14, 512, %s265_s17, [#allocation10], %s1471_s22, %s1471_s22, %s1472_s23  }
  0x19   : > { %s279_s21 = sshll.u32 %s1804_s4, 4  ;;  %s298_s19 = sshll.u32 %s1474_s16, 4  ;;  %s280_s21 = int_to_ptr.hbm [resolvable:$true] %s279_s21  ;;  %s299_s19 = int_to_ptr.vmem [resolvable:$true] %s298_s19 }
  0x1a   : > { %1124 = dma.hbm_to_vmem [thread:$0]  (!%p1578_p5), %s280_s21, 512, %s282_s25, [#allocation13], %s1471_s22, %s1471_s22, %s1472_s23  }
  0x1b   : > { %s296_s13 = sshll.u32 %s1805_s6, 4  ;;  %s1064_s14 = sadd.s32 4294967294, %s1468_s10   ;;  %s297_s13 = int_to_ptr.hbm [resolvable:$true] %s296_s13 }
  0x1c   : > { %1127 = dma.hbm_to_vmem [thread:$0]  (!%p1578_p5), %s297_s13, 512, %s299_s19, [#allocation13], %s1471_s22, %s1471_s22, %s1472_s23  }
  0x1d   : > { %s40_s17 = sadd.s32 1, %s1464_s9  ;;  %s49_s20 = sadd.s32 1, %s1456_s29 }
  0x1e   : > { %p42_p7 = scmp.ge.s32.totalorder %s40_s17, 2  ;;  %p56_p8 = scmp.ne.s32.totalorder %s1456_s29, %s1452_s28 }
  0x1f   : > { %p57_p9 = scmp.eq.s32.totalorder %s1468_s10, 0  ;;  %p62_p10 = scmp.ne.s32.totalorder %s1452_s28, %s1448_s27 }
  0x20   : > { %s1822_s17 = smov (%p42_p7, %s40_s17), 0  ;;  %p238_p13 = scmp.eq.s32.totalorder %s1562_s11, 1 }
  0x21   : > { %1806 = sst [smem:[#allocation24_spill]] %s1822_s17  ;;  %p1605_p11 = por %p57_p9, %p56_p8 }
  0x22   : > { %p1611_p12 = por %p63_p1, %p62_p10  ;;  %s44_s22 = ssub.s32 %s1464_s9, %s1822_s17 }
  0x23   : > { %p47_p0 = scmp.eq.s32.totalorder %s44_s22, 0  ;;  %p244_p2 = scmp.eq.s32.totalorder %s1064_s14, 1 }
  0x24   : > { %p1618_p4 = por %p238_p13, %p56_p8  ;;  %p1142_p5 = scmp.lt.s32.totalorder %s1468_s10, 2 }
  0x25   : > { %s1624_s24 = scalar_select %p47_p0, %s1456_s29, %s49_s20  }
  0x26   : > { %p1626_p7 = por %p244_p2, %p62_p10  ;;  %s315_s26 = sand.u32 1, %s1456_s29  }
  0x27   : > { %1810 = sst [smem:[#allocation25_spill]] %s1624_s24  ;;  %s1070_s12 = sshll.u32 %s315_s26, 3 }
  0x28   : > { %s1811_s25 = scalar_select %p1626_p7, 1, 0 }
  0x29   : > { %s1071_s13 = sshll.u32 %s1464_s9, 3  ;;  %s319_s14 = scalar_lea.vmem [#allocation6], %s1070_s12 }
  0x2a   : > { %1812 = sst [smem:[#allocation26_spill]] %s1811_s25  ;;  %s324_s22 = scalar_lea.hbm %s1781_s0, %s1071_s13 }
  0x2b   : > { %s328_s2 = sshll.u32 %s319_s14, 4  ;;  %s326_s4 = sshll.u32 %s324_s22, 4  ;;  %s329_s2 = int_to_ptr.vmem [resolvable:$true] %s328_s2  ;;  %s327_s4 = int_to_ptr.hbm [resolvable:$true] %s326_s4 }
  0x2c   : > { %p1129_p8 = pnand %p1142_p5, %p1605_p11  ;;  %s343_s17 = scalar_lea.hbm %s1782_s1, %s1071_s13 }
  0x2d   : > { %s335_s24 = sand.u32 1, %s1468_s10   ;;  %s316_s25 = scalar_lea.sflag [#allocation7], %s315_s26 }
  0x2e   : > { %1131 = dma.hbm_to_vmem [thread:$0]  (!%p1129_p8), %s327_s4, 128, %s329_s2, %s316_s25  }
  0x2f   : > { %s345_s29 = sshll.u32 %s343_s17, 4  ;;  %s339_s9 = scalar_lea.vmem [#allocation9], %s1070_s12  ;;  %s346_s29 = int_to_ptr.hbm [resolvable:$true] %s345_s29 }
  0x30   : > { %s347_s27 = sshll.u32 %s339_s9, 4  ;;  %s336_s16 = scalar_lea.sflag [#allocation10], %s335_s24  ;;  %s348_s27 = int_to_ptr.vmem [resolvable:$true] %s347_s27 }
  0x31   : > { %1134 = dma.hbm_to_vmem [thread:$0]  (!%p1129_p8), %s346_s29, 128, %s348_s27, %s336_s16  }
  0x32   : > { %356 = sbr.rel (%p1570_p3) target bundleno = 1059 (0x423), region = 52  ;;  %s1644_s21 = sand.u32 (!%p1570_p3), 1, %s1452_s28  }
  0x33   : > { %s1647_s6 = sshll.u32 (!%p1570_p3), %s1644_s21, 3  ;;  %s359_s2 = scalar_lea.sflag (!%p1570_p3), [#allocation7], %s1644_s21 }
  0x34   : > { %s362_s4 = scalar_lea.vmem (!%p1570_p3), [#allocation6], %s1647_s6 }
  0x37   : > { %1427 = dma.done.wait (%p1611_p12), %s359_s2, 128  }
  0x38   : > { %1429 = vsyncadd (%p1611_p12), %s359_s2, 4294967168  ;;  %s368_s27 = sand.u32 1, %s1562_s11   ;;  %s372_s9 = scalar_lea.vmem [#allocation9], %s1647_s6 }
  0x39   : > { %s369_s29 = scalar_lea.sflag [#allocation10], %s368_s27 }
  0x3a   : > { %1431 = dma.done.wait (%p1611_p12), %s369_s29, 128  }
  0x3b   : > { %1433 = vsyncadd (%p1611_p12), %s369_s29, 4294967168 }
  0x3c   : > { %1435 = dma.done.wait (%p63_p1), [#allocation10], 512  }
  0x3d   : > { %1437 = vsyncadd (%p63_p1), [#allocation10], 4294966784 }
  0x3e   : > { %1439 = dma.done.wait (%p63_p1), [#allocation13], 1024  }
  0x3f   : > { %1441 = vsyncadd (%p63_p1), [#allocation13], 4294966272  ;;  %v434_v0 = vld [vmem:[#allocation12 + $0x18] sm:$0xff]  ;;  %v433_v2 = vld [vmem:[#allocation12 + $0x10] sm:$0xff]  ;;  %vm439_vm0 = vcmask 261120   ;;  %vm499_vm1 = vcmask 64512  }
  0x40   : > { %v469_v1 = vld [vmem:[#allocation11 + $0x18] sm:$0xff]  ;;  %455 = vmatpush.msra.mxu0 %v434_v0  ;;  %v468_v3 = vld [vmem:[#allocation11 + $0x10] sm:$0xff]  ;;  %v432_v4 = vld [vmem:[#allocation12 + $0x8] sm:$0xff]  ;;  %s1475_s24 = smov 112   ;;  %s1476_s25 = smov 120   ;;  %v1482_v46 = vmov 0.0  }
  0x41   : > { %490 = vmatpush.msra.mxu1 %v469_v1  ;;  %v467_v5 = vld [vmem:[#allocation11 + $0x8] sm:$0xff]  ;;  %v431_v6 = vld [vmem:[#allocation12] sm:$0xff]  ;;  %v430_v8 = vld [vmem:[%s372_s9] sm:$0xff]  ;;  %s1477_s26 = smov 104   ;;  %s1478_s12 = smov 80   ;;  %464 = vst.msk [vmem:[#allocation4] sm:$0xff] %vm439_vm0, %v1482_v46 }
  0x42   : > { %456 = vmatpush.msra.mxu0 %v433_v2  ;;  %v466_v7 = vld [vmem:[#allocation11] sm:$0xff]  ;;  %v1211_v10 = vld [vmem:[%s1786_s5] ss:$0 sm:$0xff]  ;;  %s1479_s13 = smov 88   ;;  %s1480_s19 = smov 72   ;;  %vm728_vm6 = vcmask 130112  }
  0x43   : > { %491 = vmatpush.msra.mxu1 %v468_v3  ;;  %v465_v9 = vld [vmem:[%s362_s4] sm:$0xff]  ;;  %s1481_s22 = smov 96   ;;  %s1483_s14 = smov 8   ;;  %vm764_vm7 = vcmask 195712   ;;  %vm800_vm8 = vcmask 261312   ;;  %vm810_vm9 = vcmask 1041409  }
  0x44   : > { %457 = vmatpush.msra.mxu0 %v432_v4  ;;  %v1212_v11 = vld [vmem:[%s1784_s3] ss:$0 sm:$0xff]  ;;  %s1484_s20 = smov 24   ;;  %s1485_s16 = smov 16   ;;  %vm813_vm10 = vcmask 58368   ;;  %vm817_vm11 = vcmask 1042434  }
  0x45   : > { %492 = vmatpush.msra.mxu1 %v467_v5  ;;  %vm826_vm12 = vcmask 1043459   ;;  %vm835_vm13 = vcmask 1044484   ;;  %vm822_vm14 = vcmask 124993   ;;  %vm831_vm15 = vcmask 191618   ;;  %s1097_s2 = sshll.u32 %s1460_s30, 3  ;;  %s425_s15 = scalar_lea.vmem [#allocation15], %s1647_s6 }
  0x46   : > { %458 = vmatpush.msra.mxu0 %v431_v6  ;;  %s928_s29 = scalar_lea.hbm %s1789_s8, %s1097_s2  ;;  %s930_s17 = sshll.u32 %s425_s15, 4  ;;  %s931_s17 = int_to_ptr.vmem [resolvable:$true] %s930_s17 }
  0x47   : > { %493 = vmatpush.msra.mxu1 %v466_v7  ;;  %1081 = vmatmul.msk.f32.vlgmr.msra.gmra.mxu0 %vm439_vm0, %v430_v8  ;;  %s932_s18 = sshll.u32 %s928_s29, 4  ;;  %s1394_s6 = scalar_lea.hbm %s1789_s8, 16  ;;  %s933_s18 = int_to_ptr.hbm [resolvable:$true] %s932_s18 }
  0x48   : > { %1082 = vmatmul.msk.f32.vlgmr.msra.gmra.mxu1 %vm439_vm0, %v465_v9  ;;  %v665_v8 = vld [vmem:[#allocation4] sm:$0xff]  ;;  %s1388_s30 = sshra.s32 %s933_s18, 4  ;;  %s1389_s30 = int_to_ptr.hbm [resolvable:$true] %s1388_s30 }
  0x49   : > { %p1395_p10 = scmp.lt.s32.totalorder %s1389_s30, %s1789_s8 }
  0xc4   : > { %v460_v12 = vpop.f32.mrf.mxu0 }
  0xc5   : > { %v495_v13 = vpop.f32.mrf.mxu1  ;;  %v461_v14 = vadd.f32 %v1211_v10, %v460_v12 }
  0xc6   : > { %v496_v15 = vadd.f32 %v1212_v11, %v495_v13 }
  0xc7   : > { %463 = vst.msk [vmem:[#allocation2] sm:$0xff] %vm439_vm0, %v461_v14 }
  0xc8   : > { %564 = vrot.lane.b32.xlu1 %v496_v15, %s1475_s24  ;;  %531 = vrot.lane.b32.xlu0 %v496_v15, %s1476_s25 }
  0xc9   : > { %1083 = vmatpush.xpose.msk.msra.mxu2 %vm499_vm1, %v496_v15 }
  0xce   : > { %v560_v16 = vld [vmem:[#allocation2] sm:$0xff] }
  0xcf   : > { %562 = vrot.lane.b32.xlu2 %v560_v16, %s1475_s24  ;;  %1084 = vmatmul.msk.f32.vlgmr.msra.gmra.mxu2 %vm499_vm1, %v560_v16 }
  0xd0   : > { %597 = vrot.lane.b32.xlu1 %v496_v15, %s1477_s26  ;;  %529 = vrot.lane.b32.xlu0 %v560_v16, %s1476_s25 }
  0xd7   : > { %595 = vrot.lane.b32.xlu2 %v560_v16, %s1477_s26 }
  0xd8   : > { %733 = vrot.lane.b32.xlu1 %v496_v15, %s1478_s12  ;;  %697 = vrot.lane.b32.xlu0 %v496_v15, %s1479_s13 }
  0xdf   : > { %769 = vrot.lane.b32.xlu2 %v496_v15, %s1480_s19 }
  0xe0   : > { %666 = vrot.lane.b32.xlu0 %v496_v15, %s1481_s22 }
 0x129   : > { %v563_v17 = vpop.permute.xlu2 %562 }
 0x131   : > { %v596_v18 = vpop.permute.xlu2 %595 }
 0x139   : > { %v770_v23 = vpop.permute.xlu2 %769 }
 0x13a   : > { %v565_v19 = vpop.permute.xlu1 %564  ;;  %v532_v20 = vpop.permute.xlu0 %531 }
 0x13b   : > { %1085 = vmatpush.xpose.msk.msra.mxu3 %vm499_vm1, %v532_v20  ;;  %1087 = vmatpush.xpose.msk.msrb.mxu2 %vm499_vm1, %v565_v19 }
 0x13e   : > { %1088 = vmatmul.msk.f32.vlgmr.msrb.gmra.mxu2 %vm499_vm1, %v563_v17 }
 0x142   : > { %v598_v21 = vpop.permute.xlu1 %597  ;;  %v530_v22 = vpop.permute.xlu0 %529 }
 0x143   : > { %1089 = vmatpush.xpose.msk.msrb.mxu3 %vm499_vm1, %v598_v21 }
 0x144   : > { %1086 = vmatmul.msk.f32.vlgmr.msra.gmra.mxu3 %vm499_vm1, %v530_v22 }
 0x147   : > { %790 = vmatpush.msra.mxu3 %v770_v23 }
 0x14a   : > { %v734_v24 = vpop.permute.xlu1 %733  ;;  %v698_v25 = vpop.permute.xlu0 %697 }
 0x14b   : > { %754 = vmatpush.msra.mxu2 %v734_v24  ;;  %718 = vmatpush.msrb.mxu1 %v698_v25 }
 0x14c   : > { %1090 = vmatmul.msk.f32.vlgmr.msrb.gmra.mxu3 %vm499_vm1, %v596_v18 }
 0x152   : > { %v667_v26 = vpop.permute.xlu0 %666  ;;  %v523_v27 = vpop.f32.mrf.mxu2 }
 0x153   : > { %687 = vmatpush.msrb.mxu0 %v667_v26  ;;  %526 = vst.msk [vmem:[#allocation3] sm:$0xff] %vm499_vm1, %v523_v27 }
 0x15a   : > { %v626_v34 = vld [vmem:[#allocation3] sm:$0xff] }
 0x1c1   : > { %v587_v28 = vpop.f32.mrf.mxu2 }
 0x1c2   : > { %591 = vst.msk [vmem:[#allocation3 + $0x10] sm:$0xff] %vm499_vm1, %v587_v28 }
 0x1c7   : > { %v554_v29 = vpop.f32.mrf.mxu3 }
 0x1c8   : > { %558 = vst.msk [vmem:[#allocation3 + $0x8] sm:$0xff] %vm499_vm1, %v554_v29  ;;  %v559_v30 = vmax.f32 %v523_v27, %v554_v29 }
 0x1c9   : > { %v637_v36 = vld [vmem:[#allocation3 + $0x10] sm:$0xff] }
 0x1ca   : > { %v592_v31 = vmax.f32 %v559_v30, %v587_v28 }
 0x1cf   : > { %v620_v32 = vpop.f32.mrf.mxu3  ;;  %v631_v35 = vld [vmem:[#allocation3 + $0x8] sm:$0xff] }
 0x1d0   : > { %624 = vst.msk [vmem:[#allocation3 + $0x18] sm:$0xff] %vm499_vm1, %v620_v32  ;;  %v625_v33 = vmax.f32 %v592_v31, %v620_v32 }
 0x1d2   : > { %v627_v37 = vsub.f32 %v626_v34, %v625_v33  ;;  %v632_v38 = vsub.f32 %v631_v35, %v625_v33  ;;  %v638_v39 = vsub.f32 %v637_v36, %v625_v33 }
 0x1d4   : > { %v628_v40 = vmul.f32 1.442695, %v627_v37  ;;  %v633_v41 = vmul.f32 1.442695, %v632_v38  ;;  %v639_v42 = vmul.f32 1.442695, %v638_v39 }
 0x1d6   : > { %1214 = vpow2.f32 %v628_v40  ;;  %v888_v40 = vld [vmem:[#allocation14 + $0x18] sm:$0xff] }
 0x1d7   : > { %1216 = vpow2.f32 %v633_v41  ;;  %v643_v43 = vld [vmem:[#allocation3 + $0x18] sm:$0xff]  ;;  %v887_v41 = vld [vmem:[#allocation14 + $0x10] sm:$0xff]  ;;  %908 = vmatpush.msra.mxu0 %v888_v40 }
 0x1d8   : > { %1218 = vpow2.f32 %v639_v42  ;;  %v644_v44 = vsub.f32 %v643_v43, %v625_v33  ;;  %v886_v42 = vld [vmem:[#allocation14 + $0x8] sm:$0xff]  ;;  %v885_v43 = vld [vmem:[#allocation14] sm:$0xff] }
 0x1d9   : > { %909 = vmatpush.msra.mxu0 %v887_v41 }
 0x1da   : > { %v645_v45 = vmul.f32 1.442695, %v644_v44 }
 0x1db   : > { %910 = vmatpush.msra.mxu0 %v886_v42 }
 0x1dc   : > { %v1215_v47 = vpop.eup %1214  ;;  %1220 = vpow2.f32 %v645_v45 }
 0x1dd   : > { %v1217_v48 = vpop.eup %1216  ;;  %630 = vst.msk [vmem:[#allocation3] sm:$0xff] %vm499_vm1, %v1215_v47  ;;  %911 = vmatpush.msra.mxu0 %v885_v43 }
 0x1de   : > { %v1219_v49 = vpop.eup %1218  ;;  %635 = vst.msk [vmem:[#allocation3 + $0x8] sm:$0xff] %vm499_vm1, %v1217_v48  ;;  %v636_v50 = vadd.f32 %v1217_v48, %v1215_v47 }
 0x1df   : > { %641 = vst.msk [vmem:[#allocation3 + $0x10] sm:$0xff] %vm499_vm1, %v1219_v49 }
 0x1e0   : > { %v642_v51 = vadd.f32 %v1219_v49, %v636_v50 }
 0x1e2   : > { %v1221_v52 = vpop.eup %1220 }
 0x1e3   : > { %647 = vst.msk [vmem:[#allocation3 + $0x18] sm:$0xff] %vm499_vm1, %v1221_v52  ;;  %v648_v53 = vadd.f32 %v1221_v52, %v642_v51 }
 0x1e4   : > { %v663_v63 = vld [vmem:[#allocation3] sm:$0xff] }
 0x1e5   : > { %1222 = vrcp.f32 %v648_v53  ;;  %v660_v57 = vand.u32 2147483648, %v648_v53  ;;  %v658_v59 = vand.u32 2147483647, %v648_v53  ;;  %vm654_vm3 = vweird.f32 %v648_v53  ;;  %v694_v1 = vld [vmem:[#allocation3 + $0x8] sm:$0xff] }
 0x1e6   : > { %v730_v2 = vld [vmem:[#allocation3 + $0x10] sm:$0xff] }
 0x1e7   : > { %v661_v61 = vor.u32 1.1754944e-38, %v660_v57  ;;  %vm659_vm5 = vcmp.eq.f32.partialorder %v658_v59, 8.507059e+37 }
 0x1ea   : > { %v766_v3 = vld [vmem:[#allocation3 + $0x18] sm:$0xff] }
 0x1eb   : > { %v1223_v54 = vpop.eup %1222 }
 0x1ec   : > { %v650_v55 = vmul.f32 %v1223_v54, %v648_v53  ;;  %vm655_vm2 = vweird.f32 %v1223_v54 }
 0x1ed   : > { %vm656_vm4 = vmor %vm654_vm3, %vm655_vm2 }
 0x1ee   : > { %v651_v56 = vsub.f32 1.0, %v650_v55 }
 0x1f0   : > { %v652_v58 = vmul.f32 %v1223_v54, %v651_v56 }
 0x1f2   : > { %v653_v60 = vadd.f32 %v1223_v54, %v652_v58 }
 0x1f4   : > { %v657_v62 = vsel %vm656_vm4, %v1223_v54, %v653_v60  ;;  %v1213_v54 = vld [vmem:[%s1788_s7] ss:$0 sm:$0xff] }
 0x1f5   : > { %v662_v0 = vsel %vm659_vm5, %v661_v61, %v657_v62 }
 0x1f6   : > { %v664_v4 = vmul.f32 %v663_v63, %v662_v0  ;;  %v695_v5 = vmul.f32 %v694_v1, %v662_v0  ;;  %v731_v6 = vmul.f32 %v730_v2, %v662_v0  ;;  %v767_v7 = vmul.f32 %v766_v3, %v662_v0 }
 0x1f8   : > { %1091 = vmatmul.msk.f32.vlgmr.msrb.gmra.mxu0 %vm499_vm1, %v664_v4  ;;  %1092 = vmatmul.msk.f32.vlgmr.msrb.gmra.mxu1 %vm499_vm1, %v695_v5 }
 0x1f9   : > { %1093 = vmatmul.msk.f32.vlgmr.msra.gmra.mxu2 %vm499_vm1, %v731_v6  ;;  %1094 = vmatmul.msk.f32.vlgmr.msra.gmra.mxu3 %vm499_vm1, %v767_v7 }
 0x275   : > { %v689_v9 = vpop.f32.mrf.mxu0  ;;  %v720_v10 = vpop.f32.mrf.mxu1 }
 0x276   : > { %v692_v11 = vadd.f32 %v689_v9, %v665_v8  ;;  %724 = vrot.lane.b32.xlu1 %v720_v10, %s1483_s14 }
 0x278   : > { %693 = vst.msk [vmem:[#allocation4] sm:$0xff] %vm499_vm1, %v692_v11  ;;  %vm840_vm1 = vcmask 258243  }
 0x27c   : > { %v756_v12 = vpop.f32.mrf.mxu2  ;;  %v792_v13 = vpop.f32.mrf.mxu3 }
 0x27d   : > { %796 = vrot.lane.b32.xlu0 %v792_v13, %s1484_s20  ;;  %760 = vrot.lane.b32.xlu2 %v756_v12, %s1485_s16 }
 0x27f   : > { %v696_v15 = vld [vmem:[#allocation4] sm:$0xff] }
 0x2d7   : > { %v761_v17 = vpop.permute.xlu2 %760 }
 0x2e8   : > { %v725_v14 = vpop.permute.xlu1 %724 }
 0x2e9   : > { %v727_v16 = vadd.f32 %v725_v14, %v696_v15 }
 0x2eb   : > { %729 = vst.msk [vmem:[#allocation4] sm:$0xff] %vm728_vm6, %v727_v16 }
 0x2ef   : > { %v797_v20 = vpop.permute.xlu0 %796 }
 0x2f2   : > { %v732_v18 = vld [vmem:[#allocation4] sm:$0xff] }
 0x2f3   : > { %v763_v19 = vadd.f32 %v761_v17, %v732_v18 }
 0x2f5   : > { %765 = vst.msk [vmem:[#allocation4] sm:$0xff] %vm764_vm7, %v763_v19 }
 0x2fc   : > { %v768_v21 = vld [vmem:[#allocation4] sm:$0xff] }
 0x2fd   : > { %v799_v22 = vadd.f32 %v797_v20, %v768_v21 }
 0x2ff   : > { %801 = vst.msk [vmem:[#allocation4] sm:$0xff] %vm800_vm8, %v799_v22 }
 0x306   : > { %v805_v23 = vld [vmem:[#allocation4] sm:$0xff] }
 0x307   : > { %v807_v24 = vrot.slane %v805_v23, 4  ;;  %v808_v25 = vperm.slane %v805_v23, 0  ;;  %v815_v29 = vperm.slane %v805_v23, 1  ;;  %v824_v32 = vperm.slane %v805_v23, 2 }
 0x308   : > { %v833_v35 = vperm.slane %v805_v23, 3 }
 0x309   : > { %v809_v26 = vperm.slane %v807_v24, 0  ;;  %v816_v28 = vperm.slane %v807_v24, 1  ;;  %v825_v31 = vperm.slane %v807_v24, 2  ;;  %v834_v34 = vperm.slane %v807_v24, 3 }
 0x30b   : > { %v811_v27 = vsel %vm810_vm9, %v809_v26, %v808_v25  ;;  %v818_v30 = vsel %vm817_vm11, %v816_v28, %v815_v29  ;;  %v827_v33 = vsel %vm826_vm12, %v825_v31, %v824_v32  ;;  %v836_v36 = vsel %vm835_vm13, %v834_v34, %v833_v35 }
 0x30c   : > { %870 = vrot.lane.b32.xlu0 %v811_v27, %s1477_s26  ;;  %856 = vrot.lane.b32.xlu2 %v811_v27, %s1475_s24  ;;  %814 = vst.msk [vmem:[#allocation5] sm:$0x3] %vm813_vm10, %v811_v27 }
 0x30d   : > { %842 = vrot.lane.b32.xlu1 %v811_v27, %s1476_s25 }
 0x314   : > { %874 = vrot.lane.b32.xlu0 %v818_v30, %s1475_s24  ;;  %860 = vrot.lane.b32.xlu2 %v818_v30, %s1476_s25  ;;  %s918_s24 = scalar_lea.sflag [#allocation8], %s1644_s21 }
 0x315   : > { %819 = vrot.lane.b32.xlu1 %v818_v30, %s1483_s14 }
 0x31c   : > { %878 = vrot.lane.b32.xlu0 %v827_v33, %s1476_s25  ;;  %848 = vrot.lane.b32.xlu2 %v827_v33, %s1483_s14  ;;  %s1390_s25 = scalar_lea.hbm %s1389_s30, 8 }
 0x31d   : > { %828 = vrot.lane.b32.xlu1 %v827_v33, %s1485_s16  ;;  %p1391_p1 = scmp.ne.s32.totalorder %s1389_s30, %s1390_s25  ;;  %p1396_p11 = scmp.lt.s32.totalorder %s1394_s6, %s1390_s25 }
 0x31f   : > { %p1392_p3 = pnand %p1391_p1, %p1618_p4  ;;  %p1397_p12 = por %p1396_p11, %p1395_p10 }
 0x321   : > { %p1393_p9 = pneg %p1392_p3 }
 0x323   : > { %p1398_p13 = pnand %p1397_p12, %p1393_p9 }
 0x324   : > { %866 = vrot.lane.b32.xlu0 %v836_v36, %s1483_s14  ;;  %852 = vrot.lane.b32.xlu2 %v836_v36, %s1485_s16 }
 0x325   : > { %837 = vrot.lane.b32.xlu1 %v836_v36, %s1484_s20 }
 0x366   : > { %v857_v37 = vpop.permute.xlu2 %856 }
 0x367   : > { %859 = vst.msk [vmem:[#allocation5 + $0x4] sm:$0x3] %vm813_vm10, %v857_v37 }
 0x36e   : > { %v861_v38 = vpop.permute.xlu2 %860 }
 0x36f   : > { %863 = vst.msk [vmem:[#allocation5 + $0x3] sm:$0x6] %vm822_vm14, %v861_v38 }
 0x370   : > { %865 = vst.msk [vmem:[#allocation5 + $0x2] sm:$0xc] %vm831_vm15, %v827_v33 }
 0x376   : > { %v849_v39 = vpop.permute.xlu2 %848 }
 0x37e   : > { %v871_v44 = vpop.permute.xlu0 %870  ;;  %v853_v46 = vpop.permute.xlu2 %852 }
 0x37f   : > { %873 = vst.msk [vmem:[#allocation5 + $0x6] sm:$0x3] %vm813_vm10, %v871_v44  ;;  %v843_v45 = vpop.permute.xlu1 %842 }
 0x380   : > { %845 = vst.msk [vmem:[#allocation5 + $0x2] sm:$0x3] %vm813_vm10, %v843_v45 }
 0x381   : > { %847 = vst.msk [vmem:[#allocation5 + $0x1] sm:$0x6] %vm822_vm14, %v818_v30 }
 0x382   : > { %851 = vst.msk [vmem:[#allocation5] sm:$0xc] %vm831_vm15, %v849_v39 }
 0x383   : > { %855 = vst.msk [vmem:[#allocation5 - $0x1] sm:$0x18] %vm840_vm1, %v853_v46 }
 0x386   : > { %v875_v47 = vpop.permute.xlu0 %874 }
 0x387   : > { %877 = vst.msk [vmem:[#allocation5 + $0x5] sm:$0x6] %vm822_vm14, %v875_v47  ;;  %v820_v48 = vpop.permute.xlu1 %819 }
 0x388   : > { %823 = vst.msk [vmem:[#allocation5 - $0x1] sm:$0x6] %vm822_vm14, %v820_v48 }
 0x38e   : > { %v879_v49 = vpop.permute.xlu0 %878 }
 0x38f   : > { %881 = vst.msk [vmem:[#allocation5 + $0x4] sm:$0xc] %vm831_vm15, %v879_v49  ;;  %v829_v50 = vpop.permute.xlu1 %828 }
 0x390   : > { %883 = vst.msk [vmem:[#allocation5 + $0x3] sm:$0x18] %vm840_vm1, %v836_v36 }
 0x391   : > { %832 = vst.msk [vmem:[#allocation5 - $0x2] sm:$0xc] %vm831_vm15, %v829_v50 }
 0x396   : > { %v867_v51 = vpop.permute.xlu0 %866 }
 0x397   : > { %869 = vst.msk [vmem:[#allocation5 + $0x1] sm:$0x18] %vm840_vm1, %v867_v51  ;;  %v838_v52 = vpop.permute.xlu1 %837 }
 0x398   : > { %841 = vst.msk [vmem:[#allocation5 - $0x3] sm:$0x18] %vm840_vm1, %v838_v52 }
 0x39f   : > { %v884_v53 = vld [vmem:[#allocation5] sm:$0xff] }
 0x3a0   : > { %1095 = vmatmul.msk.f32.vlgmr.msra.gmra.mxu0 %vm439_vm0, %v884_v53 }
 0x41d   : > { %v913_v55 = vpop.f32.mrf.mxu0 }
 0x41e   : > { %v914_v56 = vadd.f32 %v1213_v54, %v913_v55 }
 0x420   : > { %916 = vst.msk [vmem:[%s425_s15] sm:$0xff] %vm439_vm0, %v914_v56 }
 0x421   : > { %1401 = shalt.err (!%p1398_p13)
}
 0x422   : > { %1116 = dma.vmem_to_hbm [thread:$0]  (%p1618_p4), %s931_s17, 128, %s933_s18, %s918_s24  }
 0x423 PF: > { %s1813_s21 = sld [smem:[#allocation21_spill]]  ;;  %p1136_p0 = pnand %p1069_p6, %p1626_p7 }
 0x425   : > { %p1137_p2 = pneg %p1136_p0 }
 0x429   : > { %s944_s14 = sand.u32 1, %s1813_s21  }
 0x42a   : > { %s945_s20 = scalar_lea.sflag [#allocation8], %s944_s14 }
 0x42b   : > { %1443 = dma.done.wait (%p1137_p2), %s945_s20, 128  }
 0x42c   : > { %1445 = vsyncadd (%p1137_p2), %s945_s20, 4294967168  ;;  %s28_s10 = sadd.s32 1, %s1468_s10   ;;  %s1815_s16 = sld [smem:[#allocation22_spill]] }
 0x42d   : > { %p25_p5 = scmp.ge.s32.totalorder %s28_s10, 4   ;;  %s1816_s29 = sld [smem:[#allocation25_spill]] }
 0x42e   : > { %s1817_s30 = sld [smem:[#allocation23_spill]]  ;;  %s1819_s27 = smov %s1452_s28 }
 0x42f   : > { %s1818_s9 = sld [smem:[#allocation24_spill]]  ;;  %27 = sbr.rel (!%p25_p5) target bundleno = 13 (0xd), region = 133 }
 0x432   : > { %s1820_s28 = smov %s1815_s16 }
 0x434   :  { %951 = vsyncpa [#allocation7], 1 }
 0x435   :  { %953 = vsyncpa [#allocation7 + $0x1], 1 }
 0x436   :  { %954 = vsyncpa [#allocation10], 1 }
 0x437   :  { %956 = vsyncpa [#allocation10 + $0x1], 1 }
 0x438   :  { %957 = vsyncpa [#allocation13], 1 }
 0x439   :  { %958 = vsyncpa [#allocation8], 1 }
 0x43a   :  { %960 = vsyncpa [#allocation8 + $0x1], 1 }

// kernel: tpu_custom_call.1
= control target key start
LH: loop header
LB: loop body
LE: loop exit
PB: predicated region body
PF: predicated region fallthrough
CT: control target
= control target key end

     0   :  { %s1781_s0 = inlined_call_operand.hbm [shape: f32[2,8,32], index: 0, kind: input, shape index: {}]   ;;  %s1782_s1 = inlined_call_operand.hbm [shape: f32[2,8,32], index: 1, kind: input, shape index: {}]   ;;  %s1783_s2 = inlined_call_operand.hbm [shape: f32[32,64], index: 2, kind: input, shape index: {}]   ;;  %s1784_s3 = inlined_call_operand.vmem [shape: f32[1,64], index: 3, kind: input, shape index: {}]   ;;  %s1785_s4 = inlined_call_operand.hbm [shape: f32[32,32], index: 4, kind: input, shape index: {}]   ;;  %s1786_s5 = inlined_call_operand.vmem [shape: f32[1,32], index: 5, kind: input, shape index: {}]   ;;  %s1787_s6 = inlined_call_operand.hbm [shape: f32[32,32], index: 6, kind: input, shape index: {}]   ;;  %s1788_s7 = inlined_call_operand.vmem [shape: f32[1,32], index: 7, kind: input, shape index: {}]   ;;  %s1789_s8 = inlined_call_operand.hbm [shape: f32[2,8,32], index: 8, kind: output, shape index: {}]  }
   0x1   :  { %1795 = sst [smem:[#allocation27_spill]] %s1783_s2 }
   0x2   :  { %1796 = sst [smem:[#allocation28_spill]] %s1785_s4 }
   0x3   :  { %1797 = sst [smem:[#allocation29_spill]] %s1787_s6 }
   0x4   :  { %13 = vsyncpa [#allocation7], 0 }
   0x5   :  { %15 = vsyncpa [#allocation7 + $0x1], 0 }
   0x6   :  { %16 = vsyncpa [#allocation10], 0 }
   0x7   :  { %18 = vsyncpa [#allocation10 + $0x1], 0 }
   0x8   :  { %19 = vsyncpa [#allocation13], 0 }
   0x9   :  { %20 = vsyncpa [#allocation8], 0 }
   0xa   :  { %22 = vsyncpa [#allocation8 + $0x1], 0  ;;  %s1531_s27 = smov 0   ;;  %s1533_s28 = smov 0  }
   0xb   :  { %s1535_s29 = smov 0   ;;  %s1537_s30 = smov 0  }
   0xc   :  { %s1539_s9 = smov 0   ;;  %s1541_s10 = smov 0  }
   0xd LB: > { %1798 = sst [smem:[#allocation21_spill]] %s1448_s27  ;;  %s1562_s11 = sadd.s32 4294967295, %s1468_s10   ;;  %s1468_s10 = sphi %s1541_s10, %s28_s10   ;;  %s1464_s9 = sphi %s1539_s9, %s1818_s9   ;;  %s1460_s30 = sphi %s1537_s30, %s1817_s30   ;;  %s1456_s29 = sphi %s1535_s29, %s1816_s29   ;;  %s1452_s28 = sphi %s1533_s28, %s1820_s28   ;;  %s1448_s27 = sphi %s1531_s27, %s1819_s27  }
   0xe   : > { %1799 = sst [smem:[#allocation22_spill]] %s1456_s29  ;;  %p1065_p0 = scmp.ge.s32.totalorder %s1468_s10, 1 }
   0xf   : > { %1800 = sst [smem:[#allocation23_spill]] %s1464_s9  ;;  %p63_p1 = scmp.eq.s32.totalorder %s1562_s11, 0 }
  0x10   : > { %p251_p2 = scmp.lt.s32.totalorder %s1468_s10, 3  ;;  %s1801_s2 = sld [smem:[#allocation27_spill]] }
  0x11   : > { %s1470_s16 = smov [#allocation11]   ;;  %p1069_p6 = scmp.ge.s32.totalorder %s1468_s10, 2 }
  0x12   : > { %p1570_p3 = pnand %p1065_p0, %p251_p2  ;;  %s264_s17 = sshll.u32 %s1470_s16, 4  ;;  %s265_s17 = int_to_ptr.vmem [resolvable:$true] %s264_s17 }
  0x13   : > { %s1804_s4 = sld [smem:[#allocation28_spill]]  ;;  %s1471_s22 = smov 128  }
  0x14   : > { %p1118_p4 = pneg %p1570_p3  ;;  %s1472_s23 = smov 8  }
  0x15   : > { %s1473_s24 = smov [#allocation12]   ;;  %s1805_s6 = sld [smem:[#allocation29_spill]] }
  0x16   : > { %s262_s14 = sshll.u32 %s1801_s2, 4  ;;  %p1578_p5 = pnand %p1118_p4, %p63_p1  ;;  %s263_s14 = int_to_ptr.hbm [resolvable:$true] %s262_s14 }
  0x17   : > { %s281_s25 = sshll.u32 %s1473_s24, 4  ;;  %s1474_s16 = smov [#allocation14]   ;;  %s282_s25 = int_to_ptr.vmem [resolvable:$true] %s281_s25 }
  0x18   : > { %1121 = dma.hbm_to_vmem [thread:$0]  (!%p1578_p5), %s263_s14, 512, %s265_s17, [#allocation10], %s1471_s22, %s1471_s22, %s1472_s23  }
  0x19   : > { %s279_s21 = sshll.u32 %s1804_s4, 4  ;;  %s298_s19 = sshll.u32 %s1474_s16, 4  ;;  %s280_s21 = int_to_ptr.hbm [resolvable:$true] %s279_s21  ;;  %s299_s19 = int_to_ptr.vmem [resolvable:$true] %s298_s19 }
  0x1a   : > { %1124 = dma.hbm_to_vmem [thread:$0]  (!%p1578_p5), %s280_s21, 512, %s282_s25, [#allocation13], %s1471_s22, %s1471_s22, %s1472_s23  }
  0x1b   : > { %s296_s13 = sshll.u32 %s1805_s6, 4  ;;  %s1064_s14 = sadd.s32 4294967294, %s1468_s10   ;;  %s297_s13 = int_to_ptr.hbm [resolvable:$true] %s296_s13 }
  0x1c   : > { %1127 = dma.hbm_to_vmem [thread:$0]  (!%p1578_p5), %s297_s13, 512, %s299_s19, [#allocation13], %s1471_s22, %s1471_s22, %s1472_s23  }
  0x1d   : > { %s40_s17 = sadd.s32 1, %s1464_s9  ;;  %s49_s20 = sadd.s32 1, %s1456_s29 }
  0x1e   : > { %p42_p7 = scmp.ge.s32.totalorder %s40_s17, 2  ;;  %p56_p8 = scmp.ne.s32.totalorder %s1456_s29, %s1452_s28 }
  0x1f   : > { %p57_p9 = scmp.eq.s32.totalorder %s1468_s10, 0  ;;  %p62_p10 = scmp.ne.s32.totalorder %s1452_s28, %s1448_s27 }
  0x20   : > { %s1822_s17 = smov (%p42_p7, %s40_s17), 0  ;;  %p238_p13 = scmp.eq.s32.totalorder %s1562_s11, 1 }
  0x21   : > { %1806 = sst [smem:[#allocation24_spill]] %s1822_s17  ;;  %p1605_p11 = por %p57_p9, %p56_p8 }
  0x22   : > { %p1611_p12 = por %p63_p1, %p62_p10  ;;  %s44_s22 = ssub.s32 %s1464_s9, %s1822_s17 }
  0x23   : > { %p47_p0 = scmp.eq.s32.totalorder %s44_s22, 0  ;;  %p244_p2 = scmp.eq.s32.totalorder %s1064_s14, 1 }
  0x24   : > { %p1618_p4 = por %p238_p13, %p56_p8  ;;  %p1142_p5 = scmp.lt.s32.totalorder %s1468_s10, 2 }
  0x25   : > { %s1624_s24 = scalar_select %p47_p0, %s1456_s29, %s49_s20  }
  0x26   : > { %p1626_p7 = por %p244_p2, %p62_p10  ;;  %s315_s26 = sand.u32 1, %s1456_s29  }
  0x27   : > { %1810 = sst [smem:[#allocation25_spill]] %s1624_s24  ;;  %s1070_s12 = sshll.u32 %s315_s26, 3 }
  0x28   : > { %s1811_s25 = scalar_select %p1626_p7, 1, 0 }
  0x29   : > { %s1071_s13 = sshll.u32 %s1464_s9, 3  ;;  %s319_s14 = scalar_lea.vmem [#allocation6], %s1070_s12 }
  0x2a   : > { %1812 = sst [smem:[#allocation26_spill]] %s1811_s25  ;;  %s324_s22 = scalar_lea.hbm %s1781_s0, %s1071_s13 }
  0x2b   : > { %s328_s2 = sshll.u32 %s319_s14, 4  ;;  %s326_s4 = sshll.u32 %s324_s22, 4  ;;  %s329_s2 = int_to_ptr.vmem [resolvable:$true] %s328_s2  ;;  %s327_s4 = int_to_ptr.hbm [resolvable:$true] %s326_s4 }
  0x2c   : > { %p1129_p8 = pnand %p1142_p5, %p1605_p11  ;;  %s343_s17 = scalar_lea.hbm %s1782_s1, %s1071_s13 }
  0x2d   : > { %s335_s24 = sand.u32 1, %s1468_s10   ;;  %s316_s25 = scalar_lea.sflag [#allocation7], %s315_s26 }
  0x2e   : > { %1131 = dma.hbm_to_vmem [thread:$0]  (!%p1129_p8), %s327_s4, 128, %s329_s2, %s316_s25  }
  0x2f   : > { %s345_s29 = sshll.u32 %s343_s17, 4  ;;  %s339_s9 = scalar_lea.vmem [#allocation9], %s1070_s12  ;;  %s346_s29 = int_to_ptr.hbm [resolvable:$true] %s345_s29 }
  0x30   : > { %s347_s27 = sshll.u32 %s339_s9, 4  ;;  %s336_s16 = scalar_lea.sflag [#allocation10], %s335_s24  ;;  %s348_s27 = int_to_ptr.vmem [resolvable:$true] %s347_s27 }
  0x31   : > { %1134 = dma.hbm_to_vmem [thread:$0]  (!%p1129_p8), %s346_s29, 128, %s348_s27, %s336_s16  }
  0x32   : > { %356 = sbr.rel (%p1570_p3) target bundleno = 1059 (0x423), region = 52  ;;  %s1644_s21 = sand.u32 (!%p1570_p3), 1, %s1452_s28  }
  0x33   : > { %s1647_s6 = sshll.u32 (!%p1570_p3), %s1644_s21, 3  ;;  %s359_s2 = scalar_lea.sflag (!%p1570_p3), [#allocation7], %s1644_s21 }
  0x34   : > { %s362_s4 = scalar_lea.vmem (!%p1570_p3), [#allocation6], %s1647_s6 }
  0x37   : > { %1427 = dma.done.wait (%p1611_p12), %s359_s2, 128  }
  0x38   : > { %1429 = vsyncadd (%p1611_p12), %s359_s2, 4294967168  ;;  %s368_s27 = sand.u32 1, %s1562_s11   ;;  %s372_s9 = scalar_lea.vmem [#allocation9], %s1647_s6 }
  0x39   : > { %s369_s29 = scalar_lea.sflag [#allocation10], %s368_s27 }
  0x3a   : > { %1431 = dma.done.wait (%p1611_p12), %s369_s29, 128  }
  0x3b   : > { %1433 = vsyncadd (%p1611_p12), %s369_s29, 4294967168 }
  0x3c   : > { %1435 = dma.done.wait (%p63_p1), [#allocation10], 512  }
  0x3d   : > { %1437 = vsyncadd (%p63_p1), [#allocation10], 4294966784 }
  0x3e   : > { %1439 = dma.done.wait (%p63_p1), [#allocation13], 1024  }
  0x3f   : > { %1441 = vsyncadd (%p63_p1), [#allocation13], 4294966272  ;;  %v434_v0 = vld [vmem:[#allocation12 + $0x18] sm:$0xff]  ;;  %v433_v2 = vld [vmem:[#allocation12 + $0x10] sm:$0xff]  ;;  %vm439_vm0 = vcmask 261120   ;;  %vm499_vm1 = vcmask 64512  }
  0x40   : > { %v469_v1 = vld [vmem:[#allocation11 + $0x18] sm:$0xff]  ;;  %455 = vmatpush.msra.mxu0 %v434_v0  ;;  %v468_v3 = vld [vmem:[#allocation11 + $0x10] sm:$0xff]  ;;  %v432_v4 = vld [vmem:[#allocation12 + $0x8] sm:$0xff]  ;;  %s1475_s24 = smov 112   ;;  %s1476_s25 = smov 120   ;;  %v1482_v46 = vmov 0.0  }
  0x41   : > { %490 = vmatpush.msra.mxu1 %v469_v1  ;;  %v467_v5 = vld [vmem:[#allocation11 + $0x8] sm:$0xff]  ;;  %v431_v6 = vld [vmem:[#allocation12] sm:$0xff]  ;;  %v430_v8 = vld [vmem:[%s372_s9] sm:$0xff]  ;;  %s1477_s26 = smov 104   ;;  %s1478_s12 = smov 80   ;;  %464 = vst.msk [vmem:[#allocation4] sm:$0xff] %vm439_vm0, %v1482_v46 }
  0x42   : > { %456 = vmatpush.msra.mxu0 %v433_v2  ;;  %v466_v7 = vld [vmem:[#allocation11] sm:$0xff]  ;;  %v1211_v10 = vld [vmem:[%s1786_s5] ss:$0 sm:$0xff]  ;;  %s1479_s13 = smov 88   ;;  %s1480_s19 = smov 72   ;;  %vm728_vm6 = vcmask 130112  }
  0x43   : > { %491 = vmatpush.msra.mxu1 %v468_v3  ;;  %v465_v9 = vld [vmem:[%s362_s4] sm:$0xff]  ;;  %s1481_s22 = smov 96   ;;  %s1483_s14 = smov 8   ;;  %vm764_vm7 = vcmask 195712   ;;  %vm800_vm8 = vcmask 261312   ;;  %vm810_vm9 = vcmask 1041409  }
  0x44   : > { %457 = vmatpush.msra.mxu0 %v432_v4  ;;  %v1212_v11 = vld [vmem:[%s1784_s3] ss:$0 sm:$0xff]  ;;  %s1484_s20 = smov 24   ;;  %s1485_s16 = smov 16   ;;  %vm813_vm10 = vcmask 58368   ;;  %vm817_vm11 = vcmask 1042434  }
  0x45   : > { %492 = vmatpush.msra.mxu1 %v467_v5  ;;  %vm826_vm12 = vcmask 1043459   ;;  %vm835_vm13 = vcmask 1044484   ;;  %vm822_vm14 = vcmask 124993   ;;  %vm831_vm15 = vcmask 191618   ;;  %s1097_s2 = sshll.u32 %s1460_s30, 3  ;;  %s425_s15 = scalar_lea.vmem [#allocation15], %s1647_s6 }
  0x46   : > { %458 = vmatpush.msra.mxu0 %v431_v6  ;;  %s928_s29 = scalar_lea.hbm %s1789_s8, %s1097_s2  ;;  %s930_s17 = sshll.u32 %s425_s15, 4  ;;  %s931_s17 = int_to_ptr.vmem [resolvable:$true] %s930_s17 }
  0x47   : > { %493 = vmatpush.msra.mxu1 %v466_v7  ;;  %1081 = vmatmul.msk.f32.vlgmr.msra.gmra.mxu0 %vm439_vm0, %v430_v8  ;;  %s932_s18 = sshll.u32 %s928_s29, 4  ;;  %s1394_s6 = scalar_lea.hbm %s1789_s8, 16  ;;  %s933_s18 = int_to_ptr.hbm [resolvable:$true] %s932_s18 }
  0x48   : > { %1082 = vmatmul.msk.f32.vlgmr.msra.gmra.mxu1 %vm439_vm0, %v465_v9  ;;  %v665_v8 = vld [vmem:[#allocation4] sm:$0xff]  ;;  %s1388_s30 = sshra.s32 %s933_s18, 4  ;;  %s1389_s30 = int_to_ptr.hbm [resolvable:$true] %s1388_s30 }
  0x49   : > { %p1395_p10 = scmp.lt.s32.totalorder %s1389_s30, %s1789_s8 }
  0xc4   : > { %v460_v12 = vpop.f32.mrf.mxu0 }
  0xc5   : > { %v495_v13 = vpop.f32.mrf.mxu1  ;;  %v461_v14 = vadd.f32 %v1211_v10, %v460_v12 }
  0xc6   : > { %v496_v15 = vadd.f32 %v1212_v11, %v495_v13 }
  0xc7   : > { %463 = vst.msk [vmem:[#allocation2] sm:$0xff] %vm439_vm0, %v461_v14 }
  0xc8   : > { %564 = vrot.lane.b32.xlu1 %v496_v15, %s1475_s24  ;;  %531 = vrot.lane.b32.xlu0 %v496_v15, %s1476_s25 }
  0xc9   : > { %1083 = vmatpush.xpose.msk.msra.mxu2 %vm499_vm1, %v496_v15 }
  0xce   : > { %v560_v16 = vld [vmem:[#allocation2] sm:$0xff] }
  0xcf   : > { %562 = vrot.lane.b32.xlu2 %v560_v16, %s1475_s24  ;;  %1084 = vmatmul.msk.f32.vlgmr.msra.gmra.mxu2 %vm499_vm1, %v560_v16 }
  0xd0   : > { %597 = vrot.lane.b32.xlu1 %v496_v15, %s1477_s26  ;;  %529 = vrot.lane.b32.xlu0 %v560_v16, %s1476_s25 }
  0xd7   : > { %595 = vrot.lane.b32.xlu2 %v560_v16, %s1477_s26 }
  0xd8   : > { %733 = vrot.lane.b32.xlu1 %v496_v15, %s1478_s12  ;;  %697 = vrot.lane.b32.xlu0 %v496_v15, %s1479_s13 }
  0xdf   : > { %769 = vrot.lane.b32.xlu2 %v496_v15, %s1480_s19 }
  0xe0   : > { %666 = vrot.lane.b32.xlu0 %v496_v15, %s1481_s22 }
 0x129   : > { %v563_v17 = vpop.permute.xlu2 %562 }
 0x131   : > { %v596_v18 = vpop.permute.xlu2 %595 }
 0x139   : > { %v770_v23 = vpop.permute.xlu2 %769 }
 0x13a   : > { %v565_v19 = vpop.permute.xlu1 %564  ;;  %v532_v20 = vpop.permute.xlu0 %531 }
 0x13b   : > { %1085 = vmatpush.xpose.msk.msra.mxu3 %vm499_vm1, %v532_v20  ;;  %1087 = vmatpush.xpose.msk.msrb.mxu2 %vm499_vm1, %v565_v19 }
 0x13e   : > { %1088 = vmatmul.msk.f32.vlgmr.msrb.gmra.mxu2 %vm499_vm1, %v563_v17 }
 0x142   : > { %v598_v21 = vpop.permute.xlu1 %597  ;;  %v530_v22 = vpop.permute.xlu0 %529 }
 0x143   : > { %1089 = vmatpush.xpose.msk.msrb.mxu3 %vm499_vm1, %v598_v21 }
 0x144   : > { %1086 = vmatmul.msk.f32.vlgmr.msra.gmra.mxu3 %vm499_vm1, %v530_v22 }
 0x147   : > { %790 = vmatpush.msra.mxu3 %v770_v23 }
 0x14a   : > { %v734_v24 = vpop.permute.xlu1 %733  ;;  %v698_v25 = vpop.permute.xlu0 %697 }
 0x14b   : > { %754 = vmatpush.msra.mxu2 %v734_v24  ;;  %718 = vmatpush.msrb.mxu1 %v698_v25 }
 0x14c   : > { %1090 = vmatmul.msk.f32.vlgmr.msrb.gmra.mxu3 %vm499_vm1, %v596_v18 }
 0x152   : > { %v667_v26 = vpop.permute.xlu0 %666  ;;  %v523_v27 = vpop.f32.mrf.mxu2 }
 0x153   : > { %687 = vmatpush.msrb.mxu0 %v667_v26  ;;  %526 = vst.msk [vmem:[#allocation3] sm:$0xff] %vm499_vm1, %v523_v27 }
 0x15a   : > { %v626_v34 = vld [vmem:[#allocation3] sm:$0xff] }
 0x1c1   : > { %v587_v28 = vpop.f32.mrf.mxu2 }
 0x1c2   : > { %591 = vst.msk [vmem:[#allocation3 + $0x10] sm:$0xff] %vm499_vm1, %v587_v28 }
 0x1c7   : > { %v554_v29 = vpop.f32.mrf.mxu3 }
 0x1c8   : > { %558 = vst.msk [vmem:[#allocation3 + $0x8] sm:$0xff] %vm499_vm1, %v554_v29  ;;  %v559_v30 = vmax.f32 %v523_v27, %v554_v29 }
 0x1c9   : > { %v637_v36 = vld [vmem:[#allocation3 + $0x10] sm:$0xff] }
 0x1ca   : > { %v592_v31 = vmax.f32 %v559_v30, %v587_v28 }
 0x1cf   : > { %v620_v32 = vpop.f32.mrf.mxu3  ;;  %v631_v35 = vld [vmem:[#allocation3 + $0x8] sm:$0xff] }
 0x1d0   : > { %624 = vst.msk [vmem:[#allocation3 + $0x18] sm:$0xff] %vm499_vm1, %v620_v32  ;;  %v625_v33 = vmax.f32 %v592_v31, %v620_v32 }
 0x1d2   : > { %v627_v37 = vsub.f32 %v626_v34, %v625_v33  ;;  %v632_v38 = vsub.f32 %v631_v35, %v625_v33  ;;  %v638_v39 = vsub.f32 %v637_v36, %v625_v33 }
 0x1d4   : > { %v628_v40 = vmul.f32 1.442695, %v627_v37  ;;  %v633_v41 = vmul.f32 1.442695, %v632_v38  ;;  %v639_v42 = vmul.f32 1.442695, %v638_v39 }
 0x1d6   : > { %1214 = vpow2.f32 %v628_v40  ;;  %v888_v40 = vld [vmem:[#allocation14 + $0x18] sm:$0xff] }
 0x1d7   : > { %1216 = vpow2.f32 %v633_v41  ;;  %v643_v43 = vld [vmem:[#allocation3 + $0x18] sm:$0xff]  ;;  %v887_v41 = vld [vmem:[#allocation14 + $0x10] sm:$0xff]  ;;  %908 = vmatpush.msra.mxu0 %v888_v40 }
 0x1d8   : > { %1218 = vpow2.f32 %v639_v42  ;;  %v644_v44 = vsub.f32 %v643_v43, %v625_v33  ;;  %v886_v42 = vld [vmem:[#allocation14 + $0x8] sm:$0xff]  ;;  %v885_v43 = vld [vmem:[#allocation14] sm:$0xff] }
 0x1d9   : > { %909 = vmatpush.msra.mxu0 %v887_v41 }
 0x1da   : > { %v645_v45 = vmul.f32 1.442695, %v644_v44 }
 0x1db   : > { %910 = vmatpush.msra.mxu0 %v886_v42 }
 0x1dc   : > { %v1215_v47 = vpop.eup %1214  ;;  %1220 = vpow2.f32 %v645_v45 }
 0x1dd   : > { %v1217_v48 = vpop.eup %1216  ;;  %630 = vst.msk [vmem:[#allocation3] sm:$0xff] %vm499_vm1, %v1215_v47  ;;  %911 = vmatpush.msra.mxu0 %v885_v43 }
 0x1de   : > { %v1219_v49 = vpop.eup %1218  ;;  %635 = vst.msk [vmem:[#allocation3 + $0x8] sm:$0xff] %vm499_vm1, %v1217_v48  ;;  %v636_v50 = vadd.f32 %v1217_v48, %v1215_v47 }
 0x1df   : > { %641 = vst.msk [vmem:[#allocation3 + $0x10] sm:$0xff] %vm499_vm1, %v1219_v49 }
 0x1e0   : > { %v642_v51 = vadd.f32 %v1219_v49, %v636_v50 }
 0x1e2   : > { %v1221_v52 = vpop.eup %1220 }
 0x1e3   : > { %647 = vst.msk [vmem:[#allocation3 + $0x18] sm:$0xff] %vm499_vm1, %v1221_v52  ;;  %v648_v53 = vadd.f32 %v1221_v52, %v642_v51 }
 0x1e4   : > { %v663_v63 = vld [vmem:[#allocation3] sm:$0xff] }
 0x1e5   : > { %1222 = vrcp.f32 %v648_v53  ;;  %v660_v57 = vand.u32 2147483648, %v648_v53  ;;  %v658_v59 = vand.u32 2147483647, %v648_v53  ;;  %vm654_vm3 = vweird.f32 %v648_v53  ;;  %v694_v1 = vld [vmem:[#allocation3 + $0x8] sm:$0xff] }
 0x1e6   : > { %v730_v2 = vld [vmem:[#allocation3 + $0x10] sm:$0xff] }
 0x1e7   : > { %v661_v61 = vor.u32 1.1754944e-38, %v660_v57  ;;  %vm659_vm5 = vcmp.eq.f32.partialorder %v658_v59, 8.507059e+37 }
 0x1ea   : > { %v766_v3 = vld [vmem:[#allocation3 + $0x18] sm:$0xff] }
 0x1eb   : > { %v1223_v54 = vpop.eup %1222 }
 0x1ec   : > { %v650_v55 = vmul.f32 %v1223_v54, %v648_v53  ;;  %vm655_vm2 = vweird.f32 %v1223_v54 }
 0x1ed   : > { %vm656_vm4 = vmor %vm654_vm3, %vm655_vm2 }
 0x1ee   : > { %v651_v56 = vsub.f32 1.0, %v650_v55 }
 0x1f0   : > { %v652_v58 = vmul.f32 %v1223_v54, %v651_v56 }
 0x1f2   : > { %v653_v60 = vadd.f32 %v1223_v54, %v652_v58 }
 0x1f4   : > { %v657_v62 = vsel %vm656_vm4, %v1223_v54, %v653_v60  ;;  %v1213_v54 = vld [vmem:[%s1788_s7] ss:$0 sm:$0xff] }
 0x1f5   : > { %v662_v0 = vsel %vm659_vm5, %v661_v61, %v657_v62 }
 0x1f6   : > { %v664_v4 = vmul.f32 %v663_v63, %v662_v0  ;;  %v695_v5 = vmul.f32 %v694_v1, %v662_v0  ;;  %v731_v6 = vmul.f32 %v730_v2, %v662_v0  ;;  %v767_v7 = vmul.f32 %v766_v3, %v662_v0 }
 0x1f8   : > { %1091 = vmatmul.msk.f32.vlgmr.msrb.gmra.mxu0 %vm499_vm1, %v664_v4  ;;  %1092 = vmatmul.msk.f32.vlgmr.msrb.gmra.mxu1 %vm499_vm1, %v695_v5 }
 0x1f9   : > { %1093 = vmatmul.msk.f32.vlgmr.msra.gmra.mxu2 %vm499_vm1, %v731_v6  ;;  %1094 = vmatmul.msk.f32.vlgmr.msra.gmra.mxu3 %vm499_vm1, %v767_v7 }
 0x275   : > { %v689_v9 = vpop.f32.mrf.mxu0  ;;  %v720_v10 = vpop.f32.mrf.mxu1 }
 0x276   : > { %v692_v11 = vadd.f32 %v689_v9, %v665_v8  ;;  %724 = vrot.lane.b32.xlu1 %v720_v10, %s1483_s14 }
 0x278   : > { %693 = vst.msk [vmem:[#allocation4] sm:$0xff] %vm499_vm1, %v692_v11  ;;  %vm840_vm1 = vcmask 258243  }
 0x27c   : > { %v756_v12 = vpop.f32.mrf.mxu2  ;;  %v792_v13 = vpop.f32.mrf.mxu3 }
 0x27d   : > { %796 = vrot.lane.b32.xlu0 %v792_v13, %s1484_s20  ;;  %760 = vrot.lane.b32.xlu2 %v756_v12, %s1485_s16 }
 0x27f   : > { %v696_v15 = vld [vmem:[#allocation4] sm:$0xff] }
 0x2d7   : > { %v761_v17 = vpop.permute.xlu2 %760 }
 0x2e8   : > { %v725_v14 = vpop.permute.xlu1 %724 }
 0x2e9   : > { %v727_v16 = vadd.f32 %v725_v14, %v696_v15 }
 0x2eb   : > { %729 = vst.msk [vmem:[#allocation4] sm:$0xff] %vm728_vm6, %v727_v16 }
 0x2ef   : > { %v797_v20 = vpop.permute.xlu0 %796 }
 0x2f2   : > { %v732_v18 = vld [vmem:[#allocation4] sm:$0xff] }
 0x2f3   : > { %v763_v19 = vadd.f32 %v761_v17, %v732_v18 }
 0x2f5   : > { %765 = vst.msk [vmem:[#allocation4] sm:$0xff] %vm764_vm7, %v763_v19 }
 0x2fc   : > { %v768_v21 = vld [vmem:[#allocation4] sm:$0xff] }
 0x2fd   : > { %v799_v22 = vadd.f32 %v797_v20, %v768_v21 }
 0x2ff   : > { %801 = vst.msk [vmem:[#allocation4] sm:$0xff] %vm800_vm8, %v799_v22 }
 0x306   : > { %v805_v23 = vld [vmem:[#allocation4] sm:$0xff] }
 0x307   : > { %v807_v24 = vrot.slane %v805_v23, 4  ;;  %v808_v25 = vperm.slane %v805_v23, 0  ;;  %v815_v29 = vperm.slane %v805_v23, 1  ;;  %v824_v32 = vperm.slane %v805_v23, 2 }
 0x308   : > { %v833_v35 = vperm.slane %v805_v23, 3 }
 0x309   : > { %v809_v26 = vperm.slane %v807_v24, 0  ;;  %v816_v28 = vperm.slane %v807_v24, 1  ;;  %v825_v31 = vperm.slane %v807_v24, 2  ;;  %v834_v34 = vperm.slane %v807_v24, 3 }
 0x30b   : > { %v811_v27 = vsel %vm810_vm9, %v809_v26, %v808_v25  ;;  %v818_v30 = vsel %vm817_vm11, %v816_v28, %v815_v29  ;;  %v827_v33 = vsel %vm826_vm12, %v825_v31, %v824_v32  ;;  %v836_v36 = vsel %vm835_vm13, %v834_v34, %v833_v35 }
 0x30c   : > { %870 = vrot.lane.b32.xlu0 %v811_v27, %s1477_s26  ;;  %856 = vrot.lane.b32.xlu2 %v811_v27, %s1475_s24  ;;  %814 = vst.msk [vmem:[#allocation5] sm:$0x3] %vm813_vm10, %v811_v27 }
 0x30d   : > { %842 = vrot.lane.b32.xlu1 %v811_v27, %s1476_s25 }
 0x314   : > { %874 = vrot.lane.b32.xlu0 %v818_v30, %s1475_s24  ;;  %860 = vrot.lane.b32.xlu2 %v818_v30, %s1476_s25  ;;  %s918_s24 = scalar_lea.sflag [#allocation8], %s1644_s21 }
 0x315   : > { %819 = vrot.lane.b32.xlu1 %v818_v30, %s1483_s14 }
 0x31c   : > { %878 = vrot.lane.b32.xlu0 %v827_v33, %s1476_s25  ;;  %848 = vrot.lane.b32.xlu2 %v827_v33, %s1483_s14  ;;  %s1390_s25 = scalar_lea.hbm %s1389_s30, 8 }
 0x31d   : > { %828 = vrot.lane.b32.xlu1 %v827_v33, %s1485_s16  ;;  %p1391_p1 = scmp.ne.s32.totalorder %s1389_s30, %s1390_s25  ;;  %p1396_p11 = scmp.lt.s32.totalorder %s1394_s6, %s1390_s25 }
 0x31f   : > { %p1392_p3 = pnand %p1391_p1, %p1618_p4  ;;  %p1397_p12 = por %p1396_p11, %p1395_p10 }
 0x321   : > { %p1393_p9 = pneg %p1392_p3 }
 0x323   : > { %p1398_p13 = pnand %p1397_p12, %p1393_p9 }
 0x324   : > { %866 = vrot.lane.b32.xlu0 %v836_v36, %s1483_s14  ;;  %852 = vrot.lane.b32.xlu2 %v836_v36, %s1485_s16 }
 0x325   : > { %837 = vrot.lane.b32.xlu1 %v836_v36, %s1484_s20 }
 0x366   : > { %v857_v37 = vpop.permute.xlu2 %856 }
 0x367   : > { %859 = vst.msk [vmem:[#allocation5 + $0x4] sm:$0x3] %vm813_vm10, %v857_v37 }
 0x36e   : > { %v861_v38 = vpop.permute.xlu2 %860 }
 0x36f   : > { %863 = vst.msk [vmem:[#allocation5 + $0x3] sm:$0x6] %vm822_vm14, %v861_v38 }
 0x370   : > { %865 = vst.msk [vmem:[#allocation5 + $0x2] sm:$0xc] %vm831_vm15, %v827_v33 }
 0x376   : > { %v849_v39 = vpop.permute.xlu2 %848 }
 0x37e   : > { %v871_v44 = vpop.permute.xlu0 %870  ;;  %v853_v46 = vpop.permute.xlu2 %852 }
 0x37f   : > { %873 = vst.msk [vmem:[#allocation5 + $0x6] sm:$0x3] %vm813_vm10, %v871_v44  ;;  %v843_v45 = vpop.permute.xlu1 %842 }
 0x380   : > { %845 = vst.msk [vmem:[#allocation5 + $0x2] sm:$0x3] %vm813_vm10, %v843_v45 }
 0x381   : > { %847 = vst.msk [vmem:[#allocation5 + $0x1] sm:$0x6] %vm822_vm14, %v818_v30 }
 0x382   : > { %851 = vst.msk [vmem:[#allocation5] sm:$0xc] %vm831_vm15, %v849_v39 }
 0x383   : > { %855 = vst.msk [vmem:[#allocation5 - $0x1] sm:$0x18] %vm840_vm1, %v853_v46 }
 0x386   : > { %v875_v47 = vpop.permute.xlu0 %874 }
 0x387   : > { %877 = vst.msk [vmem:[#allocation5 + $0x5] sm:$0x6] %vm822_vm14, %v875_v47  ;;  %v820_v48 = vpop.permute.xlu1 %819 }
 0x388   : > { %823 = vst.msk [vmem:[#allocation5 - $0x1] sm:$0x6] %vm822_vm14, %v820_v48 }
 0x38e   : > { %v879_v49 = vpop.permute.xlu0 %878 }
 0x38f   : > { %881 = vst.msk [vmem:[#allocation5 + $0x4] sm:$0xc] %vm831_vm15, %v879_v49  ;;  %v829_v50 = vpop.permute.xlu1 %828 }
 0x390   : > { %883 = vst.msk [vmem:[#allocation5 + $0x3] sm:$0x18] %vm840_vm1, %v836_v36 }
 0x391   : > { %832 = vst.msk [vmem:[#allocation5 - $0x2] sm:$0xc] %vm831_vm15, %v829_v50 }
 0x396   : > { %v867_v51 = vpop.permute.xlu0 %866 }
 0x397   : > { %869 = vst.msk [vmem:[#allocation5 + $0x1] sm:$0x18] %vm840_vm1, %v867_v51  ;;  %v838_v52 = vpop.permute.xlu1 %837 }
 0x398   : > { %841 = vst.msk [vmem:[#allocation5 - $0x3] sm:$0x18] %vm840_vm1, %v838_v52 }
 0x39f   : > { %v884_v53 = vld [vmem:[#allocation5] sm:$0xff] }
 0x3a0   : > { %1095 = vmatmul.msk.f32.vlgmr.msra.gmra.mxu0 %vm439_vm0, %v884_v53 }
 0x41d   : > { %v913_v55 = vpop.f32.mrf.mxu0 }
 0x41e   : > { %v914_v56 = vadd.f32 %v1213_v54, %v913_v55 }
 0x420   : > { %916 = vst.msk [vmem:[%s425_s15] sm:$0xff] %vm439_vm0, %v914_v56 }
 0x421   : > { %1401 = shalt.err (!%p1398_p13)
}
 0x422   : > { %1116 = dma.vmem_to_hbm [thread:$0]  (%p1618_p4), %s931_s17, 128, %s933_s18, %s918_s24  }
 0x423 PF: > { %s1813_s21 = sld [smem:[#allocation21_spill]]  ;;  %p1136_p0 = pnand %p1069_p6, %p1626_p7 }
 0x425   : > { %p1137_p2 = pneg %p1136_p0 }
 0x429   : > { %s944_s14 = sand.u32 1, %s1813_s21  }
 0x42a   : > { %s945_s20 = scalar_lea.sflag [#allocation8], %s944_s14 }
 0x42b   : > { %1443 = dma.done.wait (%p1137_p2), %s945_s20, 128  }
 0x42c   : > { %1445 = vsyncadd (%p1137_p2), %s945_s20, 4294967168  ;;  %s28_s10 = sadd.s32 1, %s1468_s10   ;;  %s1815_s16 = sld [smem:[#allocation22_spill]] }
 0x42d   : > { %p25_p5 = scmp.ge.s32.totalorder %s28_s10, 4   ;;  %s1816_s29 = sld [smem:[#allocation25_spill]] }
 0x42e   : > { %s1817_s30 = sld [smem:[#allocation23_spill]]  ;;  %s1819_s27 = smov %s1452_s28 }
 0x42f   : > { %s1818_s9 = sld [smem:[#allocation24_spill]]  ;;  %27 = sbr.rel (!%p25_p5) target bundleno = 13 (0xd), region = 133 }
 0x432   : > { %s1820_s28 = smov %s1815_s16 }
 0x434   :  { %951 = vsyncpa [#allocation7], 1 }
 0x435   :  { %953 = vsyncpa [#allocation7 + $0x1], 1 }
 0x436   :  { %954 = vsyncpa [#allocation10], 1 }
 0x437   :  { %956 = vsyncpa [#allocation10 + $0x1], 1 }
 0x438   :  { %957 = vsyncpa [#allocation13], 1 }
 0x439   :  { %958 = vsyncpa [#allocation8], 1 }
 0x43a   :  { %960 = vsyncpa [#allocation8 + $0x1], 1 }

</bundles_post_ra>
